<compile_context>
chip_gen: v7x
topology: tpu7x:2x2x1
jax: 0.10.0
libtpu: 0.0.40
codegen_flags: <defaults>
</compile_context>

<pallas_src>
import numpy as np
import jax
import jax.numpy as jnp
from jax import lax
from jax.experimental import pallas as pl
from jax.experimental.pallas import tpu as pltpu

NUM_GROUPS = 32
EPS = 1e-5  # nn.GroupNorm default


def _round_up(x, m):
    return (x + m - 1) // m * m


def _vmem_limit_bytes():
    # Raise the scoped-VMEM ceiling above the 16/32 MiB defaults while staying
    # under the smallest physical VMEM (64 MiB per TensorCore on v7x).
    try:
        return int(pltpu.get_tpu_info().vmem_capacity_bytes * 3 // 4)
    except Exception:
        return 48 * 1024 * 1024


def _compiler_params(sem):
    return pltpu.CompilerParams(dimension_semantics=sem,
                                vmem_limit_bytes=_vmem_limit_bytes())


# ---------------------------------------------------------------------------
# kernel A: conv3x3 (fused K=9*Cin matmul) + per-tile GroupNorm partial stats
# ---------------------------------------------------------------------------
def _make_conv_stats_kernel(th, w, cin, cout, conv_dtype):
    inv_cnt = 1.0 / float(th * w)

    def kernel(x_ref, w_ref, o_ref, st_ref):
        # x_ref : (1, 1, th+2, wpad, cin)  f32, spatially padded NHWC row tile
        # w_ref : (9*cin, cout)            conv_dtype, tap-major (dy,dx,cin)
        # o_ref : (1, 1, th, w, cout)      f32 raw conv output
        # st_ref: (1, 1, 2, cout)          f32 per-tile [sum, centered sumsq]
        #
        # dx taps: one slice of the whole row block per dx (dx=0 aligned; the
        # two unaligned slices are the only relayouts on the input path; dy is
        # a free leading-dim slice).
        xdx = [x_ref[0, 0, :, dx:dx + w, :].astype(conv_dtype)
               for dx in range(3)]
        pieces = []
        for dy in range(3):
            for dx in range(3):
                # leading-dim slice + reshape (free when w % 8 == 0)
                pieces.append(xdx[dx][dy:dy + th].reshape(th * w, cin))
        patch = jnp.concatenate(pieces, axis=-1)           # (th*w, 9*cin)
        # single fused MXU matmul, K = 9*cin, f32 accumulation
        acc = jnp.dot(patch, w_ref[...],
                      preferred_element_type=jnp.float32)  # (th*w, cout)
        # NOTE: last dim of the output block is Cout; lane-dense for the
        # production FPN sizes (Cout in {128, 256}).
        o_ref[0, 0] = acc.reshape(th, w, cout)
        # GroupNorm partial stats (combined exactly in the wrapper).
        s0 = jnp.sum(acc, axis=0, keepdims=True)           # (1, cout)
        d = acc - s0 * inv_cnt
        m2 = jnp.sum(d * d, axis=0, keepdims=True)         # (1, cout)
        st_ref[0, 0] = jnp.concatenate([s0, m2], axis=0)   # (2, cout)

    return kernel


# ---------------------------------------------------------------------------
# kernel B: normalize + ReLU (no upsample)
# ---------------------------------------------------------------------------
def _gn_relu_kernel(x_ref, s_ref, b_ref, o_ref):
    # x_ref/o_ref: (1, 1, th, w, cout);  s_ref/b_ref: (1, 1, cout)
    o_ref[...] = jnp.maximum(x_ref[...] * s_ref[...] + b_ref[...], 0.0)


# ---------------------------------------------------------------------------
# kernel C: normalize + ReLU + bilinear x2 (align_corners=True), NHWC, fused
# ---------------------------------------------------------------------------
def _make_gn_relu_upsample_kernel(h, w, cb, h_lo, h_frac):
    def kernel(x_ref, s_ref, b_ref, lwt_ref, o_ref):
        # x_ref  : (1, n_h, th, w, cb)  raw conv output for one (n, c-block)
        # s_ref/b_ref: (1, 1, cb)       folded GroupNorm scale / bias
        # lwt_ref: (w, 2w)              bilinear weights, transposed
        # o_ref  : (1, 2h, 2w, cb)
        x = x_ref[0].reshape(h, w, cb)                     # leading merge: free
        y = jnp.maximum(x * s_ref[0] + b_ref[0], 0.0)      # GN + ReLU (VPU)
        # W interpolation on the MXU: W sits on the sublane axis, so contract
        # it as the K dim of (h*cb, w) @ (w, 2w) after a minor-dims swap.
        yt = jnp.swapaxes(y, 1, 2)                         # (h, cb, w)
        yw = jnp.dot(yt.reshape(h * cb, w), lwt_ref[...],
                     preferred_element_type=jnp.float32)   # (h*cb, 2w)
        yw = yw.reshape(h, cb, 2 * w)
        # H interpolation: static 2-tap blends along the (free) leading axis.
        rows = []
        for i in range(2 * h):
            lo = h_lo[i]
            hi = min(lo + 1, h - 1)
            f = h_frac[i]
            rows.append((1.0 - f) * yw[lo] + f * yw[hi])   # (cb, 2w)
        up = jnp.stack(rows, axis=0)                       # (2h, cb, 2w)
        o_ref[0] = jnp.swapaxes(up, 1, 2)                  # (2h, 2w, cb) NHWC

    return kernel


# ---------------------------------------------------------------------------
# bilinear helpers (scale factor 2, align_corners=True) -- static tables
# ---------------------------------------------------------------------------
def _bilinear_matrix(n_in, n_out):
    m = np.zeros((n_out, n_in), np.float32)
    scale = (n_in - 1) / (n_out - 1) if n_out > 1 else 0.0
    for i in range(n_out):
        src = i * scale
        lo = min(int(np.floor(src)), n_in - 1)
        hi = min(lo + 1, n_in - 1)
        f = src - lo
        m[i, lo] += 1.0 - f
        m[i, hi] += f
    return m


def _bilinear_taps(n_in, n_out):
    scale = (n_in - 1) / (n_out - 1) if n_out > 1 else 0.0
    lo_idx, frac = [], []
    for i in range(n_out):
        src = i * scale
        lo = min(int(np.floor(src)), n_in - 1)
        lo_idx.append(lo)
        frac.append(float(src - lo))
    return lo_idx, frac


# ---------------------------------------------------------------------------
# GroupNorm: exact parallel combination of per-tile stats -> scale/bias
# ---------------------------------------------------------------------------
def _gn_scale_bias(stats, gamma, beta, tile_px):
    # stats: (N, n_h, 2, C).  Tiny O(N*C) work -> plain XLA.
    n, n_h, _, c = stats.shape
    g = c // NUM_GROUPS
    total = n_h * tile_px * g
    sum_tc = stats[:, :, 0, :]                                     # (N,n_h,C)
    m2_tc = stats[:, :, 1, :]
    mean_tc = sum_tc / tile_px
    mu_g = sum_tc.reshape(n, n_h, NUM_GROUPS, g).sum(axis=(1, 3)) / total
    mu_c = jnp.repeat(mu_g, g, axis=1)                             # (N, C)
    dev = mean_tc - mu_c[:, None, :]
    var_g = (m2_tc + tile_px * dev * dev).reshape(
        n, n_h, NUM_GROUPS, g).sum(axis=(1, 3)) / total
    inv_c = jnp.repeat(lax.rsqrt(var_g + EPS), g, axis=1)          # (N, C)
    scale = gamma[None, :] * inv_c
    bias = beta[None, :] - mu_c * scale
    return scale.reshape(n, 1, c), bias.reshape(n, 1, c)


# ---------------------------------------------------------------------------
# public wrapper
# ---------------------------------------------------------------------------
def conv3x3_gn_relu(x, weight, gamma, beta, *, upsample=False, block_h=8,
                    conv_dtype=jnp.bfloat16):
    """x: (N, Cin, H, W) NCHW f32; weight: (Cout, Cin, 3, 3); returns NCHW."""
    n, cin, h, w = x.shape
    cout = weight.shape[0]
    assert cout % NUM_GROUPS == 0
    th = min(block_h, h)
    if h % th != 0:
        th = h
    n_h = h // th
    wpad = _round_up(w + 2, 8)

    # NCHW -> NHWC, 3x3 halo pad, pad W to a sublane multiple and build
    # overlapping row tiles (1-row halo) in one XLA prep (~2/th extra rows),
    # so the kernel never needs unaligned cross-tile reads along H.
    x_nhwc = jnp.transpose(x, (0, 2, 3, 1))
    x_pad = jnp.pad(x_nhwc, ((0, 0), (1, 1), (1, wpad - (w + 1)), (0, 0)))
    x_tiles = jnp.stack(
        [x_pad[:, t * th:t * th + th + 2] for t in range(n_h)], axis=1)
    # (Cout, Cin, 3, 3) -> (9*Cin, Cout), tap-major, matmul-ready
    w_k = jnp.transpose(weight, (2, 3, 1, 0)).reshape(9 * cin, cout)
    w_k = w_k.astype(conv_dtype)

    y_conv, stats = pl.pallas_call(
        _make_conv_stats_kernel(th, w, cin, cout, conv_dtype),
        out_shape=(jax.ShapeDtypeStruct((n, n_h, th, w, cout), jnp.float32),
                   jax.ShapeDtypeStruct((n, n_h, 2, cout), jnp.float32)),
        grid=(n, n_h),
        in_specs=[
            pl.BlockSpec((1, 1, th + 2, wpad, cin),
                         lambda i, j: (i, j, 0, 0, 0)),
            pl.BlockSpec((9 * cin, cout), lambda i, j: (0, 0)),
        ],
        out_specs=(
            pl.BlockSpec((1, 1, th, w, cout), lambda i, j: (i, j, 0, 0, 0)),
            pl.BlockSpec((1, 1, 2, cout), lambda i, j: (i, j, 0, 0)),
        ),
        compiler_params=_compiler_params(("parallel", "parallel")),
    )(x_tiles, w_k)

    scale, bias = _gn_scale_bias(stats, gamma.astype(jnp.float32),
                                 beta.astype(jnp.float32), th * w)

    if not upsample:
        out = pl.pallas_call(
            _gn_relu_kernel,
            out_shape=jax.ShapeDtypeStruct((n, n_h, th, w, cout), jnp.float32),
            grid=(n, n_h),
            in_specs=[
                pl.BlockSpec((1, 1, th, w, cout),
                             lambda i, j: (i, j, 0, 0, 0)),
                pl.BlockSpec((1, 1, cout), lambda i, j: (i, 0, 0)),
                pl.BlockSpec((1, 1, cout), lambda i, j: (i, 0, 0)),
            ],
            out_specs=pl.BlockSpec((1, 1, th, w, cout),
                                   lambda i, j: (i, j, 0, 0, 0)),
            compiler_params=_compiler_params(("parallel", "parallel")),
        )(y_conv, scale, bias)
        out = out.reshape(n, h, w, cout)
        return jnp.transpose(out, (0, 3, 1, 2))

    # upsample path: GN + ReLU + bilinear x2 fused, NHWC, channel-blocked grid
    cb = cout if (cout <= 128 or cout % 128 != 0) else 128
    n_cb = cout // cb
    h_lo, h_frac = _bilinear_taps(h, 2 * h)
    lwt = jnp.asarray(_bilinear_matrix(w, 2 * w).T)                # (w, 2w)
    out_nhwc = pl.pallas_call(
        _make_gn_relu_upsample_kernel(h, w, cb, h_lo, h_frac),
        out_shape=jax.ShapeDtypeStruct((n, 2 * h, 2 * w, cout), jnp.float32),
        grid=(n, n_cb),
        in_specs=[
            pl.BlockSpec((1, n_h, th, w, cb), lambda i, j: (i, 0, 0, 0, j)),
            pl.BlockSpec((1, 1, cb), lambda i, j: (i, 0, j)),
            pl.BlockSpec((1, 1, cb), lambda i, j: (i, 0, j)),
            pl.BlockSpec((w, 2 * w), lambda i, j: (0, 0)),
        ],
        out_specs=pl.BlockSpec((1, 2 * h, 2 * w, cb),
                               lambda i, j: (i, 0, 0, j)),
        compiler_params=_compiler_params(("parallel", "parallel")),
    )(y_conv, scale, bias, lwt)
    # TODO(synk): for very large H*W*C also h-tile this kernel (needs a 1-row
    # interpolation halo across tiles).
    return jnp.transpose(out_nhwc, (0, 3, 1, 2))


# ---------------------------------------------------------------------------
# pure-XLA reference (f32)
# ---------------------------------------------------------------------------
def _reference(x, weight, gamma, beta, upsample):
    y = lax.conv_general_dilated(
        x, weight, window_strides=(1, 1), padding=((1, 1), (1, 1)),
        dimension_numbers=("NCHW", "OIHW", "NCHW"))
    n, c, h, w = y.shape
    g = c // NUM_GROUPS
    yg = y.reshape(n, NUM_GROUPS, g, h, w)
    mean = yg.mean(axis=(2, 3, 4), keepdims=True)
    var = ((yg - mean) ** 2).mean(axis=(2, 3, 4), keepdims=True)
    yn = ((yg - mean) / jnp.sqrt(var + EPS)).reshape(n, c, h, w)
    yn = yn * gamma.reshape(1, c, 1, 1) + beta.reshape(1, c, 1, 1)
    yn = jnp.maximum(yn, 0.0)
    if upsample:
        lh = jnp.asarray(_bilinear_matrix(h, 2 * h))
        lw = jnp.asarray(_bilinear_matrix(w, 2 * w))
        yn = jnp.einsum('ih,jw,nchw->ncij', lh, lw, yn)
    return yn


if __name__ == "__main__":
    key = jax.random.PRNGKey(0)
    k1, k2, k3, k4 = jax.random.split(key, 4)
    N, Cin, H, W = 2, 4, 16, 16
    Cout = 32  # GroupNorm(32, Cout) requires Cout % 32 == 0

    x = jax.random.normal(k1, (N, Cin, H, W), jnp.float32)
    weight = 0.1 * jax.random.normal(k2, (Cout, Cin, 3, 3), jnp.float32)
    gamma = 1.0 + 0.1 * jax.random.normal(k3, (Cout,), jnp.float32)
    beta = 0.1 * jax.random.normal(k4, (Cout,), jnp.float32)

    for upsample in (False, True):
        ref = _reference(x, weight, gamma, beta, upsample)
        # f32 operands: tight check of the kernel logic; bf16: fast MXU path.
        for dt, tol in ((jnp.float32, 2e-3), (jnp.bfloat16, 5e-2)):
            out = conv3x3_gn_relu(x, weight, gamma, beta,
                                  upsample=upsample, conv_dtype=dt)
            out = jax.block_until_ready(out)
            np.testing.assert_allclose(np.asarray(out), np.asarray(ref),
                                       rtol=tol, atol=tol)
    print("KERNEL_OK")
</pallas_src>

<mosaic_0001>
module attributes {stable_mosaic.version = 11 : i64} {
  func.func @kernel(%arg0: i32, %arg1: i32, %arg2: memref<1x1x10x24x4xf32, #tpu.memory_space<vmem>>, %arg3: memref<36x32xf32, #tpu.memory_space<vmem>>, %arg4: memref<1x1x8x16x32xf32, #tpu.memory_space<vmem>>, %arg5: memref<1x1x2x32xf32, #tpu.memory_space<vmem>>) attributes {dimension_semantics = [#tpu.dimension_semantics<parallel>, #tpu.dimension_semantics<parallel>], iteration_bounds = array<i64: 2, 2>, scalar_prefetch = 0 : i64, scratch_operands = 0 : i64, tpu.core_type = #tpu.core_type<tc>, window_params = [{transform_indices = @transform_0, window_bounds = array<i64: 1, 1, 10, 24, 4>}, {pipeline_mode = #tpu.pipeline_mode<synchronous>, transform_indices = @transform_1, window_bounds = array<i64: 36, 32>}, {transform_indices = @transform_2, window_bounds = array<i64: 1, 1, 8, 16, 32>}, {transform_indices = @transform_3, window_bounds = array<i64: 1, 1, 2, 32>}]} {
    %c0 = arith.constant 0 : index
    %c0_0 = arith.constant 0 : index
    %c0_1 = arith.constant 0 : index
    %c0_2 = arith.constant 0 : index
    %c0_3 = arith.constant 0 : index
    %0 = vector.load %arg2[%c0, %c0_0, %c0_1, %c0_2, %c0_3] : memref<1x1x10x24x4xf32, #tpu.memory_space<vmem>>, vector<1x1x10x16x4xf32>
    %1 = vector.shape_cast %0 : vector<1x1x10x16x4xf32> to vector<10x16x4xf32>
    %c0_4 = arith.constant 0 : index
    %c0_5 = arith.constant 0 : index
    %c0_6 = arith.constant 0 : index
    %c1 = arith.constant 1 : index
    %c0_7 = arith.constant 0 : index
    %2 = vector.load %arg2[%c0_4, %c0_5, %c0_6, %c1, %c0_7] : memref<1x1x10x24x4xf32, #tpu.memory_space<vmem>>, vector<1x1x10x16x4xf32>
    %3 = vector.shape_cast %2 : vector<1x1x10x16x4xf32> to vector<10x16x4xf32>
    %c0_8 = arith.constant 0 : index
    %c0_9 = arith.constant 0 : index
    %c0_10 = arith.constant 0 : index
    %c2 = arith.constant 2 : index
    %c0_11 = arith.constant 0 : index
    %4 = vector.load %arg2[%c0_8, %c0_9, %c0_10, %c2, %c0_11] : memref<1x1x10x24x4xf32, #tpu.memory_space<vmem>>, vector<1x1x10x16x4xf32>
    %5 = vector.shape_cast %4 : vector<1x1x10x16x4xf32> to vector<10x16x4xf32>
    %6 = vector.extract_strided_slice %1 {offsets = [0, 0, 0], sizes = [8, 16, 4], strides = [1, 1, 1]} : vector<10x16x4xf32> to vector<8x16x4xf32>
    %7 = vector.shape_cast %6 : vector<8x16x4xf32> to vector<128x4xf32>
    %8 = vector.extract_strided_slice %3 {offsets = [0, 0, 0], sizes = [8, 16, 4], strides = [1, 1, 1]} : vector<10x16x4xf32> to vector<8x16x4xf32>
    %9 = vector.shape_cast %8 : vector<8x16x4xf32> to vector<128x4xf32>
    %10 = vector.extract_strided_slice %5 {offsets = [0, 0, 0], sizes = [8, 16, 4], strides = [1, 1, 1]} : vector<10x16x4xf32> to vector<8x16x4xf32>
    %11 = vector.shape_cast %10 : vector<8x16x4xf32> to vector<128x4xf32>
    %12 = vector.extract_strided_slice %1 {offsets = [1, 0, 0], sizes = [8, 16, 4], strides = [1, 1, 1]} : vector<10x16x4xf32> to vector<8x16x4xf32>
    %13 = vector.shape_cast %12 : vector<8x16x4xf32> to vector<128x4xf32>
    %14 = vector.extract_strided_slice %3 {offsets = [1, 0, 0], sizes = [8, 16, 4], strides = [1, 1, 1]} : vector<10x16x4xf32> to vector<8x16x4xf32>
    %15 = vector.shape_cast %14 : vector<8x16x4xf32> to vector<128x4xf32>
    %16 = vector.extract_strided_slice %5 {offsets = [1, 0, 0], sizes = [8, 16, 4], strides = [1, 1, 1]} : vector<10x16x4xf32> to vector<8x16x4xf32>
    %17 = vector.shape_cast %16 : vector<8x16x4xf32> to vector<128x4xf32>
    %18 = vector.extract_strided_slice %1 {offsets = [2, 0, 0], sizes = [8, 16, 4], strides = [1, 1, 1]} : vector<10x16x4xf32> to vector<8x16x4xf32>
    %19 = vector.shape_cast %18 : vector<8x16x4xf32> to vector<128x4xf32>
    %20 = vector.extract_strided_slice %3 {offsets = [2, 0, 0], sizes = [8, 16, 4], strides = [1, 1, 1]} : vector<10x16x4xf32> to vector<8x16x4xf32>
    %21 = vector.shape_cast %20 : vector<8x16x4xf32> to vector<128x4xf32>
    %22 = vector.extract_strided_slice %5 {offsets = [2, 0, 0], sizes = [8, 16, 4], strides = [1, 1, 1]} : vector<10x16x4xf32> to vector<8x16x4xf32>
    %23 = vector.shape_cast %22 : vector<8x16x4xf32> to vector<128x4xf32>
    %24 = tpu.concatenate %7, %9, %11, %13, %15, %17, %19, %21, %23 in 1 : vector<128x4xf32>, vector<128x4xf32>, vector<128x4xf32>, vector<128x4xf32>, vector<128x4xf32>, vector<128x4xf32>, vector<128x4xf32>, vector<128x4xf32>, vector<128x4xf32> -> vector<128x36xf32>
    %c0_12 = arith.constant 0 : index
    %c0_13 = arith.constant 0 : index
    %25 = vector.load %arg3[%c0_12, %c0_13] : memref<36x32xf32, #tpu.memory_space<vmem>>, vector<36x32xf32>
    %cst = arith.constant dense<0.000000e+00> : vector<128x32xf32>
    %26 = tpu.matmul %24, %25, %cst {dimension_numbers = #tpu.dot_dimension_numbers<[1], [0], [0], [1], [0, 0, 1, 1], [], []>} : vector<128x36xf32>, vector<36x32xf32>, vector<128x32xf32> -> vector<128x32xf32>
    %27 = vector.shape_cast %26 : vector<128x32xf32> to vector<8x16x32xf32>
    %c0_14 = arith.constant 0 : index
    %c0_15 = arith.constant 0 : index
    %c0_16 = arith.constant 0 : index
    %c0_17 = arith.constant 0 : index
    %c0_18 = arith.constant 0 : index
    %28 = vector.load %arg4[%c0_14, %c0_15, %c0_16, %c0_17, %c0_18] : memref<1x1x8x16x32xf32, #tpu.memory_space<vmem>>, vector<1x1x8x16x32xf32>
    %29 = vector.shape_cast %28 : vector<1x1x8x16x32xf32> to vector<8x16x32xf32>
    %30 = vector.shape_cast %27 : vector<8x16x32xf32> to vector<1x1x8x16x32xf32>
    tpu.vector_store %arg4[%c0_14, %c0_15, %c0_16, %c0_17, %c0_18], %30 {strides = array<i32>} : memref<1x1x8x16x32xf32, #tpu.memory_space<vmem>>, vector<1x1x8x16x32xf32>,
    %cst_19 = arith.constant dense<0.000000e+00> : vector<32xf32>
    %31 = vector.multi_reduction <add>, %26, %cst_19 [0] : vector<128x32xf32> to vector<32xf32>
    %32 = vector.shape_cast %31 : vector<32xf32> to vector<1x32xf32>
    %cst_20 = arith.constant 7.812500e-03 : f32
    %33 = vector.broadcast %cst_20 : f32 to vector<1x32xf32>
    %34 = arith.mulf %32, %33 : vector<1x32xf32>
    %35 = vector.broadcast %34 : vector<1x32xf32> to vector<128x32xf32>
    %36 = arith.subf %26, %35 : vector<128x32xf32>
    %37 = arith.mulf %36, %36 : vector<128x32xf32>
    %cst_21 = arith.constant dense<0.000000e+00> : vector<32xf32>
    %38 = vector.multi_reduction <add>, %37, %cst_21 [0] : vector<128x32xf32> to vector<32xf32>
    %39 = vector.shape_cast %38 : vector<32xf32> to vector<1x32xf32>
    %40 = tpu.concatenate %32, %39 in 0 : vector<1x32xf32>, vector<1x32xf32> -> vector<2x32xf32>
    %c0_22 = arith.constant 0 : index
    %c0_23 = arith.constant 0 : index
    %c0_24 = arith.constant 0 : index
    %c0_25 = arith.constant 0 : index
    %41 = vector.load %arg5[%c0_22, %c0_23, %c0_24, %c0_25] : memref<1x1x2x32xf32, #tpu.memory_space<vmem>>, vector<1x1x2x32xf32>
    %42 = vector.shape_cast %41 : vector<1x1x2x32xf32> to vector<2x32xf32>
    %43 = vector.shape_cast %40 : vector<2x32xf32> to vector<1x1x2x32xf32>
    tpu.vector_store %arg5[%c0_22, %c0_23, %c0_24, %c0_25], %43 {strides = array<i32>} : memref<1x1x2x32xf32, #tpu.memory_space<vmem>>, vector<1x1x2x32xf32>,
    return
  }
  func.func @transform_0(%arg0: i32, %arg1: i32) -> (i32, i32, i32, i32, i32) {
    %c0_i32 = arith.constant 0 : i32
    %c0_i32_0 = arith.constant 0 : i32
    %c0_i32_1 = arith.constant 0 : i32
    %c0_i32_2 = arith.constant 0 : i32
    return %arg0, %arg1, %c0_i32, %c0_i32_0, %c0_i32_1 : i32, i32, i32, i32, i32
  }
  func.func @transform_1(%arg0: i32, %arg1: i32) -> (i32, i32) {
    %c0_i32 = arith.constant 0 : i32
    %c0_i32_0 = arith.constant 0 : i32
    %c0_i32_1 = arith.constant 0 : i32
    return %c0_i32, %c0_i32_0 : i32, i32
  }
  func.func @transform_2(%arg0: i32, %arg1: i32) -> (i32, i32, i32, i32, i32) {
    %c0_i32 = arith.constant 0 : i32
    %c0_i32_0 = arith.constant 0 : i32
    %c0_i32_1 = arith.constant 0 : i32
    %c0_i32_2 = arith.constant 0 : i32
    return %arg0, %arg1, %c0_i32, %c0_i32_0, %c0_i32_1 : i32, i32, i32, i32, i32
  }
  func.func @transform_3(%arg0: i32, %arg1: i32) -> (i32, i32, i32, i32) {
    %c0_i32 = arith.constant 0 : i32
    %c0_i32_0 = arith.constant 0 : i32
    %c0_i32_1 = arith.constant 0 : i32
    return %arg0, %arg1, %c0_i32, %c0_i32_0 : i32, i32, i32, i32
  }
}

</mosaic_0001>

<bundles_post_ra>
// kernel: tpu_custom_call.1
= control target key start
LH: loop header
LB: loop body
LE: loop exit
PB: predicated region body
PF: predicated region fallthrough
CT: control target
= control target key end

     0   :  { %9 = vsyncpa [#allocation3], 0  ;;  %s2491_s0 = inlined_call_operand.vmem [shape: f32[2,2,10,24,4], index: 0, kind: input, shape index: {}]   ;;  %s2492_s1 = inlined_call_operand.vmem [shape: f32[36,32], index: 1, kind: input, shape index: {}]   ;;  %s2493_s2 = inlined_call_operand.hbm [shape: f32[2,2,8,16,32], index: 2, kind: output, shape index: {0}]   ;;  %s2494_s3 = inlined_call_operand.hbm [shape: f32[2,2,2,32], index: 3, kind: output, shape index: {1}]  }
   0x1   :  { %11 = vsyncpa [#allocation3 + $0x1], 0 }
   0x2   :  { %12 = vsyncpa [#allocation5], 0 }
   0x3   :  { %14 = vsyncpa [#allocation5 + $0x1], 0  ;;  %s1682_s12 = smov 0   ;;  %s1684_s13 = smov 0  }
   0x4   :  { %s1686_s14 = smov 0   ;;  %s1688_s15 = smov 0  }
   0x5   :  { %s1690_s16 = smov 0   ;;  %s1692_s17 = smov 0  }
   0x6   :  { %s1694_s18 = smov 0   ;;  %s1696_s19 = smov 0  }
   0x7 LB: > { %s1333_s20 = sadd.s32 4294967295, %s1649_s19   ;;  %s1334_s21 = sadd.s32 4294967294, %s1649_s19   ;;  %s1649_s19 = sphi %s1696_s19, %s20_s19   ;;  %s1645_s18 = sphi %s1694_s18, %s2503_s18   ;;  %s1641_s17 = sphi %s1692_s17, %s2502_s17   ;;  %s1637_s16 = sphi %s1690_s16, %s2501_s16   ;;  %s1633_s15 = sphi %s1688_s15, %s2500_s15   ;;  %s1629_s14 = sphi %s1686_s14, %s2499_s14   ;;  %s1625_s13 = sphi %s1684_s13, %s2498_s13   ;;  %s1621_s12 = sphi %s1682_s12, %s2497_s12  }
   0x8   : > { %s29_s22 = sadd.s32 1, %s1641_s17  ;;  %s32_s23 = sadd.s32 1, %s1645_s18 }
   0x9   : > { %p30_p0 = scmp.ge.s32.totalorder %s29_s22, 2  ;;  %p100_p1 = scmp.ne.s32.totalorder %s1629_s14, %s1625_s13 }
   0xa   : > { %p101_p2 = scmp.eq.s32.totalorder %s1333_s20, 3  ;;  %p106_p5 = scmp.ne.s32.totalorder %s1625_s13, %s1621_s12 }
   0xb   : > { %s2505_s22 = smov (%p30_p0, %s29_s22), 0  ;;  %s2507_s23 = smov (!%p30_p0, %s32_s23), %s1645_s18 }
   0xc   : > { %s86_s24 = ssub.s32 %s1641_s17, %s2505_s22  ;;  %p1733_p3 = por %p101_p2, %p100_p1 }
   0xd   : > { %p34_p4 = scmp.ge.s32.totalorder %s2507_s23, 2  ;;  %p107_p6 = scmp.eq.s32.totalorder %s1334_s21, 3 }
   0xe   : > { %p1337_p7 = scmp.ge.s32.totalorder %s1649_s19, 1  ;;  %p168_p9 = scmp.lt.s32.totalorder %s1649_s19, 5 }
   0xf   : > { %s2509_s23 = smov (%p34_p4, %s2507_s23), 0  ;;  %p1742_p8 = por %p107_p6, %p106_p5 }
  0x10   : > { %s85_s27 = ssub.s32 %s1645_s18, %s2509_s23  ;;  %s90_s28 = sadd.s32 1, %s1629_s14 }
  0x11   : > { %s87_s29 = sor.u32 %s86_s24, %s85_s27  ;;  %p169_p10 = pnand %p1337_p7, %p168_p9 }
  0x12   : > { %p88_p11 = scmp.eq.s32.totalorder %s87_s29, 0  ;;  %p201_p12 = scmp.lt.s32.totalorder (!%p169_p10), %s1637_s16, 1  ;;  %v848_v11 = vld [vmem:[%s2492_s1] sm:$0xff] (!%p169_p10)  ;;  %v849_v12 = vld [vmem:[%s2492_s1 + $0x8] sm:$0xff] (!%p169_p10)  ;;  %v850_v14 = vld [vmem:[%s2492_s1 + $0x10] sm:$0xff] (!%p169_p10)  ;;  %vm902_vm0 = vcmask (!%p169_p10), 1043456  }
  0x13   : > { %172 = sbr.rel (%p169_p10) target bundleno = 713 (0x2c9), region = 28  ;;  %p203_p13 = scmp.lt.s32.totalorder (!%p169_p10), %s1633_s15, 1  ;;  %v1422_v13 = vpack.c.bf16 (!%p169_p10), %v849_v12, %v848_v11  ;;  %v851_v15 = vld [vmem:[%s2492_s1 + $0x18] sm:$0xff] (!%p169_p10)  ;;  %v852_v19 = vld [vmem:[%s2492_s1 + $0x20] sm:$0xf] (!%p169_p10)  ;;  %vm712_vm1 = vcmask (!%p169_p10), 31744  }
  0x14   : > { %s1751_s30 = scalar_select %p88_p11, %s1629_s14, %s90_s28  }
  0x15   : > { %s1651_s21 = smov (!%p169_p10), 8   ;;  %s1652_s24 = smov (!%p169_p10), 4   ;;  %1423 = vmatprep.subr.bf16.mxu0 (!%p169_p10), %v1422_v13  ;;  %1430 = vmatprep.subr.bf16.mxu1 (!%p169_p10), %v1422_v13  ;;  %v1426_v18 = vpack.c.bf16 (!%p169_p10), %v851_v15, %v850_v14  ;;  %vm729_vm2 = vcmask (!%p169_p10), 64512   ;;  %vm746_vm3 = vcmask (!%p169_p10), 97280   ;;  %vm763_vm4 = vcmask (!%p169_p10), 130048  }
  0x16   : > { %s1653_s27 = smov (!%p169_p10), 12   ;;  %s1654_s28 = smov (!%p169_p10), 16   ;;  %1425 = vmatpush3.bf16.msra.mxu0 (!%p169_p10), %v1422_v13  ;;  %1433 = vmatpush3.bf16.msra.mxu1 (!%p169_p10), %v1422_v13  ;;  %vm780_vm5 = vcmask (!%p169_p10), 162816   ;;  %vm797_vm6 = vcmask (!%p169_p10), 195584   ;;  %vm814_vm7 = vcmask (!%p169_p10), 228352   ;;  %vm831_vm8 = vcmask (!%p169_p10), 261120  }
  0x17   : > { %s1655_s29 = smov (!%p169_p10), 20   ;;  %1427 = vmatprep.subr.bf16.mxu0 (!%p169_p10), %v1426_v18  ;;  %1431 = vmatprep.subr.bf16.mxu1 (!%p169_p10), %v1426_v18  ;;  %vm853_vm9 = vcmask (!%p169_p10), 293888  }
  0x1a   : > { %s202_s4 = scalar_select %p201_p12, %s1637_s16, 1  ;;  %1429 = vmatpush3.bf16.msra.mxu0 %v1426_v18  ;;  %1434 = vmatpush3.bf16.msra.mxu1 %v1426_v18 }
  0x1b   : > { %s204_s5 = scalar_select %p203_p13, %s1633_s15, 1  ;;  %1396 = vmatprep.subr.msk.mxu0 %vm902_vm0, %v852_v19  ;;  %1432 = vmatprep.subr.msk.mxu1 %vm902_vm0, %v852_v19 }
  0x1c   : > { %s1437_s6 = smul.u32 60, %s202_s4 }
  0x1d   : > { %s1436_s7 = smul.u32 30, %s204_s5  ;;  %s1657_s5 = smov 28  }
  0x1e   : > { %1397 = vmatpush3.msk.msra.mxu0 %vm902_vm0, %v852_v19  ;;  %1435 = vmatpush3.msk.msra.mxu1 %vm902_vm0, %v852_v19 }
  0x1f   : > { %s207_s8 = sadd.s32 %s1437_s6, %s1436_s7 }
  0x20   : > { %s1340_s9 = sshll.u32 %s207_s8, 3  ;;  %s1656_s8 = smov 24  }
  0x21   : > { %s1760_s20 = scalar_lea.vmem %s2491_s0, %s1340_s9  ;;  %s1658_s9 = smov 32  }
  0x22   : > { %v250_v0 = vld [vmem:[%s1760_s20 + $0x2] sm:$0xff]  ;;  %v251_v2 = vld [vmem:[%s1760_s20 + $0xa] sm:$0xff]  ;;  %v1774_v5 = vld [vmem:[%s1760_s20 + $0x18] sm:$0xff] }
  0x23   : > { %v230_v1 = vld [vmem:[%s1760_s20 + $0x1] sm:$0xff]  ;;  %350 = vrot.lane.b32.xlu1 %v250_v0, %s1651_s21  ;;  %v231_v3 = vld [vmem:[%s1760_s20 + $0x9] sm:$0xff]  ;;  %v232_v6 = vld [vmem:[%s1760_s20 + $0x19] sm:$0xff] }
  0x24   : > { %286 = vrot.lane.b32.xlu0 %v230_v1, %s1652_s24  ;;  %v1771_v4 = vld [vmem:[%s1760_s20 + $0x20] sm:$0xff]  ;;  %v1790_v9 = vld [vmem:[%s1760_s20 + $0x30] sm:$0xff]  ;;  %v1813_v17 = vld [vmem:[%s1760_s20 + $0x38] sm:$0xff] }
  0x25   : > { %v252_v7 = vld [vmem:[%s1760_s20 + $0x1a] sm:$0xff]  ;;  %v253_v10 = vld [vmem:[%s1760_s20 + $0x22] sm:$0xff]  ;;  %v234_v16 = vld [vmem:[%s1760_s20 + $0x31] sm:$0xff] }
  0x26   : > { %v233_v8 = vld [vmem:[%s1760_s20 + $0x21] sm:$0xff]  ;;  %v254_v20 = vld [vmem:[%s1760_s20 + $0x32] sm:$0xff]  ;;  %v236_v24 = vld [vmem:[%s1760_s20 + $0x49] sm:$0xff] }
  0x27   : > { %352 = vrot.lane.b32.xlu1 %v251_v2, %s1651_s21  ;;  %v235_v21 = vld [vmem:[%s1760_s20 + $0x39] sm:$0xff]  ;;  %v1836_v23 = vld [vmem:[%s1760_s20 + $0x48] sm:$0xff]  ;;  %v1846_v25 = vld [vmem:[%s1760_s20 + $0x50] sm:$0xff] }
  0x28   : > { %288 = vrot.lane.b32.xlu0 %v231_v3, %s1652_s24  ;;  %v255_v22 = vld [vmem:[%s1760_s20 + $0x3a] sm:$0xff]  ;;  %v256_v26 = vld [vmem:[%s1760_s20 + $0x4a] sm:$0xff]  ;;  %v257_v28 = vld [vmem:[%s1760_s20 + $0x52] sm:$0xff] }
  0x29   : > { %v237_v27 = vld [vmem:[%s1760_s20 + $0x51] sm:$0xff]  ;;  %v1866_v29 = vld [vmem:[%s1760_s20 + $0x60] sm:$0xff]  ;;  %v1876_v31 = vld [vmem:[%s1760_s20 + $0x68] sm:$0xff] }
  0x2a   : > { %v238_v30 = vld [vmem:[%s1760_s20 + $0x61] sm:$0xff]  ;;  %v239_v33 = vld [vmem:[%s1760_s20 + $0x69] sm:$0xff]  ;;  %v1896_v37 = vld [vmem:[%s1760_s20 + $0x78] sm:$0xff] }
  0x2b   : > { %416 = vrot.lane.b32.xlu1 %v1771_v4, %s1653_s27  ;;  %v258_v32 = vld [vmem:[%s1760_s20 + $0x62] sm:$0xff]  ;;  %v259_v34 = vld [vmem:[%s1760_s20 + $0x6a] sm:$0xff]  ;;  %v240_v42 = vld [vmem:[%s1760_s20 + $0x79] sm:$0xff] }
  0x2c   : > { %414 = vrot.lane.b32.xlu0 %v1774_v5, %s1653_s27  ;;  %v1910_v43 = vld [vmem:[%s1760_s20 + $0x80] sm:$0xff]  ;;  %v1943_v62 = vld [vmem:[%s1760_s20 + $0x90] sm:$0xff]  ;;  %v211_v2 = vld [vmem:[%s1760_s20 + $0x8] sm:$0xff] }
  0x2d   : > { %v260_v48 = vld [vmem:[%s1760_s20 + $0x7a] sm:$0xff]  ;;  %v261_v54 = vld [vmem:[%s1760_s20 + $0x82] sm:$0xff]  ;;  %v242_v15 = vld [vmem:[%s1760_s20 + $0x91] sm:$0xff] }
  0x2e   : > { %v241_v49 = vld [vmem:[%s1760_s20 + $0x81] sm:$0xff] }
  0x2f   : > { %290 = vrot.lane.b32.xlu1 %v232_v6, %s1652_s24  ;;  %v210_v57 = vld [vmem:[%s1760_s20] sm:$0xff] }
  0x30   : > { %464 = vrot.lane.b32.xlu0 %v232_v6, %s1654_s28 }
  0x33   : > { %514 = vrot.lane.b32.xlu1 %v252_v7, %s1655_s29 }
  0x34   : > { %466 = vrot.lane.b32.xlu0 %v233_v8, %s1654_s28 }
  0x37   : > { %354 = vrot.lane.b32.xlu1 %v252_v7, %s1651_s21 }
  0x38   : > { %292 = vrot.lane.b32.xlu0 %v233_v8, %s1652_s24 }
  0x3b   : > { %564 = vrot.lane.b32.xlu1 %v1790_v9, %s1656_s8 }
  0x3c   : > { %516 = vrot.lane.b32.xlu0 %v253_v10, %s1655_s29 }
  0x3f   : > { %418 = vrot.lane.b32.xlu1 %v1790_v9, %s1653_s27 }
  0x40   : > { %356 = vrot.lane.b32.xlu0 %v253_v10, %s1651_s21 }
  0x43   : > { %614 = vrot.lane.b32.xlu1 %v234_v16, %s1657_s5 }
  0x44   : > { %566 = vrot.lane.b32.xlu0 %v1813_v17, %s1656_s8 }
  0x47   : > { %468 = vrot.lane.b32.xlu1 %v234_v16, %s1654_s28 }
  0x48   : > { %420 = vrot.lane.b32.xlu0 %v1813_v17, %s1653_s27 }
  0x4b   : > { %664 = vrot.lane.b32.xlu1 %v254_v20, %s1658_s9 }
  0x4c   : > { %616 = vrot.lane.b32.xlu0 %v235_v21, %s1657_s5 }
  0x4f   : > { %470 = vrot.lane.b32.xlu1 %v235_v21, %s1654_s28 }
  0x50   : > { %294 = vrot.lane.b32.xlu0 %v234_v16, %s1652_s24  ;;  %v1968_v16 = vld [vmem:[%s1760_s20 + $0x98] sm:$0xff] }
  0x53   : > { %666 = vrot.lane.b32.xlu1 %v255_v22, %s1658_s9 }
  0x54   : > { %518 = vrot.lane.b32.xlu0 %v254_v20, %s1655_s29 }
  0x57   : > { %358 = vrot.lane.b32.xlu1 %v254_v20, %s1651_s21 }
  0x58   : > { %296 = vrot.lane.b32.xlu0 %v235_v21, %s1652_s24 }
  0x5b   : > { %568 = vrot.lane.b32.xlu1 %v1836_v23, %s1656_s8 }
  0x5c   : > { %520 = vrot.lane.b32.xlu0 %v255_v22, %s1655_s29 }
  0x5f   : > { %422 = vrot.lane.b32.xlu1 %v1836_v23, %s1653_s27 }
  0x60   : > { %360 = vrot.lane.b32.xlu0 %v255_v22, %s1651_s21 }
  0x63   : > { %618 = vrot.lane.b32.xlu1 %v236_v24, %s1657_s5 }
  0x64   : > { %570 = vrot.lane.b32.xlu0 %v1846_v25, %s1656_s8 }
  0x67   : > { %472 = vrot.lane.b32.xlu1 %v236_v24, %s1654_s28 }
  0x68   : > { %424 = vrot.lane.b32.xlu0 %v1846_v25, %s1653_s27 }
  0x6b   : > { %668 = vrot.lane.b32.xlu1 %v256_v26, %s1658_s9 }
  0x6c   : > { %620 = vrot.lane.b32.xlu0 %v237_v27, %s1657_s5 }
  0x6f   : > { %474 = vrot.lane.b32.xlu1 %v237_v27, %s1654_s28 }
  0x70   : > { %298 = vrot.lane.b32.xlu0 %v236_v24, %s1652_s24 }
  0x73   : > { %670 = vrot.lane.b32.xlu1 %v257_v28, %s1658_s9 }
  0x74   : > { %522 = vrot.lane.b32.xlu0 %v256_v26, %s1655_s29 }
  0x77   : > { %362 = vrot.lane.b32.xlu1 %v256_v26, %s1651_s21 }
  0x78   : > { %300 = vrot.lane.b32.xlu0 %v237_v27, %s1652_s24 }
  0x7b   : > { %572 = vrot.lane.b32.xlu1 %v1866_v29, %s1656_s8 }
  0x7c   : > { %524 = vrot.lane.b32.xlu0 %v257_v28, %s1655_s29 }
  0x7f   : > { %426 = vrot.lane.b32.xlu1 %v1866_v29, %s1653_s27 }
  0x80   : > { %364 = vrot.lane.b32.xlu0 %v257_v28, %s1651_s21 }
  0x83   : > { %622 = vrot.lane.b32.xlu1 %v238_v30, %s1657_s5 }
  0x84   : > { %574 = vrot.lane.b32.xlu0 %v1876_v31, %s1656_s8 }
  0x87   : > { %476 = vrot.lane.b32.xlu1 %v238_v30, %s1654_s28 }
  0x88   : > { %428 = vrot.lane.b32.xlu0 %v1876_v31, %s1653_s27 }
  0x8b   : > { %672 = vrot.lane.b32.xlu1 %v258_v32, %s1658_s9 }
  0x8c   : > { %624 = vrot.lane.b32.xlu0 %v239_v33, %s1657_s5 }
  0x8f   : > { %478 = vrot.lane.b32.xlu1 %v239_v33, %s1654_s28 }
  0x90   : > { %302 = vrot.lane.b32.xlu0 %v238_v30, %s1652_s24 }
  0x93   : > { %674 = vrot.lane.b32.xlu1 %v259_v34, %s1658_s9 }
  0x94   : > { %526 = vrot.lane.b32.xlu0 %v258_v32, %s1655_s29 }
  0x95   : > { %v351_v35 = vpop.permute.xlu1 %350 }
  0x96   : > { %v287_v36 = vpop.permute.xlu0 %286 }
  0x97   : > { %366 = vrot.lane.b32.xlu1 %v258_v32, %s1651_s21  ;;  %v713_v58 = vsel %vm712_vm1, %v210_v57, %v287_v36  ;;  %v262_v32 = vld [vmem:[%s1760_s20 + $0x92] sm:$0xff] }
  0x98   : > { %304 = vrot.lane.b32.xlu0 %v239_v33, %s1652_s24  ;;  %v730_v61 = vsel %vm729_vm2, %v713_v58, %v351_v35  ;;  %v243_v33 = vld [vmem:[%s1760_s20 + $0x99] sm:$0xff] }
  0x99   : > { %v1898_v38 = vpop.permute.xlu1 %352 }
  0x9a   : > { %v289_v39 = vpop.permute.xlu0 %288 }
  0x9b   : > { %576 = vrot.lane.b32.xlu1 %v1896_v37, %s1656_s8  ;;  %v714_v8 = vsel %vm712_vm1, %v211_v2, %v289_v39  ;;  %v263_v39 = vld [vmem:[%s1760_s20 + $0x9a] sm:$0xff] }
  0x9c   : > { %528 = vrot.lane.b32.xlu0 %v259_v34, %s1655_s29  ;;  %v731_v14 = vsel %vm729_vm2, %v714_v8, %v1898_v38 }
  0x9d   : > { %v1903_v40 = vpop.permute.xlu1 %416 }
  0x9e   : > { %v415_v41 = vpop.permute.xlu0 %414  ;;  %v748_v18 = vsel %vm746_vm3, %v731_v14, %v1903_v40 }
  0x9f   : > { %430 = vrot.lane.b32.xlu1 %v1896_v37, %s1653_s27  ;;  %v747_v63 = vsel %vm746_vm3, %v730_v61, %v415_v41  ;;  %v244_v61 = vld [vmem:[%s1760_s20 + $0xa9] sm:$0xff] }
  0xa0   : > { %368 = vrot.lane.b32.xlu0 %v259_v34, %s1651_s21 }
  0xa1   : > { %v1912_v44 = vpop.permute.xlu1 %290 }
  0xa2   : > { %v465_v45 = vpop.permute.xlu0 %464 }
  0xa3   : > { %626 = vrot.lane.b32.xlu1 %v240_v42, %s1657_s5  ;;  %v764_v3 = vsel %vm763_vm4, %v747_v63, %v465_v45  ;;  %v2037_v63 = vld [vmem:[%s1760_s20 + $0xb0] sm:$0xff] }
  0xa4   : > { %578 = vrot.lane.b32.xlu0 %v1910_v43, %s1656_s8 }
  0xa5   : > { %v515_v46 = vpop.permute.xlu1 %514 }
  0xa6   : > { %v467_v47 = vpop.permute.xlu0 %466  ;;  %v781_v6 = vsel %vm780_vm5, %v764_v3, %v515_v46  ;;  %v715_v46 = vsel %vm712_vm1, %v1774_v5, %v1912_v44 }
  0xa7   : > { %480 = vrot.lane.b32.xlu1 %v240_v42, %s1654_s28  ;;  %v765_v21 = vsel %vm763_vm4, %v748_v18, %v467_v47  ;;  %v265_v18 = vld [vmem:[%s1760_s20 + $0xb2] sm:$0xff] }
  0xa8   : > { %432 = vrot.lane.b32.xlu0 %v1910_v43, %s1653_s27 }
  0xa9   : > { %v1922_v50 = vpop.permute.xlu1 %354 }
  0xaa   : > { %v1924_v51 = vpop.permute.xlu0 %292  ;;  %v732_v47 = vsel %vm729_vm2, %v715_v46, %v1922_v50  ;;  %v246_v46 = vld [vmem:[%s1760_s20 + $0xc1] sm:$0xff] }
  0xab   : > { %676 = vrot.lane.b32.xlu1 %v260_v48, %s1658_s9 }
  0xac   : > { %628 = vrot.lane.b32.xlu0 %v241_v49, %s1657_s5 }
  0xad   : > { %v565_v52 = vpop.permute.xlu1 %564 }
  0xae   : > { %v517_v53 = vpop.permute.xlu0 %516  ;;  %v798_v7 = vsel %vm797_vm6, %v781_v6, %v565_v52 }
  0xaf   : > { %482 = vrot.lane.b32.xlu1 %v241_v49, %s1654_s28  ;;  %v782_v22 = vsel %vm780_vm5, %v765_v21, %v517_v53 }
  0xb0   : > { %306 = vrot.lane.b32.xlu0 %v240_v42, %s1652_s24 }
  0xb1   : > { %v1931_v55 = vpop.permute.xlu1 %418 }
  0xb2   : > { %v1933_v56 = vpop.permute.xlu0 %356 }
  0xb3   : > { %678 = vrot.lane.b32.xlu1 %v261_v54, %s1658_s9 }
  0xb4   : > { %530 = vrot.lane.b32.xlu0 %v260_v48, %s1655_s29 }
  0xb5   : > { %v615_v59 = vpop.permute.xlu1 %614 }
  0xb6   : > { %v567_v60 = vpop.permute.xlu0 %566  ;;  %v815_v10 = vsel %vm814_vm7, %v798_v7, %v615_v59  ;;  %v716_v59 = vsel %vm712_vm1, %v1771_v4, %v1924_v51 }
  0xb7   : > { %370 = vrot.lane.b32.xlu1 %v260_v48, %s1651_s21  ;;  %v799_v24 = vsel %vm797_vm6, %v782_v22, %v567_v60  ;;  %v2011_v48 = vld [vmem:[%s1760_s20 + $0xa8] sm:$0xff]  ;;  %v733_v60 = vsel %vm729_vm2, %v716_v59, %v1933_v56 }
  0xb8   : > { %308 = vrot.lane.b32.xlu0 %v241_v49, %s1652_s24  ;;  %v749_v49 = vsel %vm746_vm3, %v732_v47, %v1931_v55  ;;  %v227_v47 = vld [vmem:[%s1760_s20 + $0xc8] sm:$0xff] }
  0xb9   : > { %v1946_v0 = vpop.permute.xlu1 %468 }
  0xba   : > { %v1948_v1 = vpop.permute.xlu0 %420  ;;  %v766_v5 = vsel %vm763_vm4, %v749_v49, %v1946_v0 }
  0xbb   : > { %580 = vrot.lane.b32.xlu1 %v1943_v62, %s1656_s8  ;;  %v750_v0 = vsel %vm746_vm3, %v733_v60, %v1948_v1 }
  0xbc   : > { %532 = vrot.lane.b32.xlu0 %v261_v54, %s1655_s29 }
  0xbd   : > { %v665_v11 = vpop.permute.xlu1 %664 }
  0xbe   : > { %v617_v12 = vpop.permute.xlu0 %616  ;;  %v832_v13 = vsel %vm831_vm8, %v815_v10, %v665_v11  ;;  %v264_v10 = vld [vmem:[%s1760_s20 + $0xaa] sm:$0xff] }
  0xbf   : > { %434 = vrot.lane.b32.xlu1 %v1943_v62, %s1653_s27  ;;  %1398 = vmatprep.mubr.msk.f32.mxu0 %vm853_vm9, %v832_v13  ;;  %v816_v26 = vsel %vm814_vm7, %v799_v24, %v617_v12  ;;  %v245_v11 = vld [vmem:[%s1760_s20 + $0xb1] sm:$0xff] }
  0xc0   : > { %372 = vrot.lane.b32.xlu0 %v261_v54, %s1651_s21 }
  0xc1   : > { %v471_v19 = vpop.permute.xlu1 %470 }
  0xc2   : > { %v1972_v20 = vpop.permute.xlu0 %294  ;;  %v767_v51 = vsel %vm763_vm4, %v750_v0, %v471_v19  ;;  %v267_v0 = vld [vmem:[%s1760_s20 + $0xca] sm:$0xff] }
  0xc3   : > { %630 = vrot.lane.b32.xlu1 %v242_v15, %s1657_s5 }
  0xc4   : > { %582 = vrot.lane.b32.xlu0 %v1968_v16, %s1656_s8 }
  0xc5   : > { %v667_v27 = vpop.permute.xlu1 %666 }
  0xc6   : > { %v519_v28 = vpop.permute.xlu0 %518  ;;  %v833_v30 = vsel %vm831_vm8, %v816_v26, %v667_v27  ;;  %v717_v26 = vsel %vm712_vm1, %v1790_v9, %v1972_v20 }
  0xc7   : > { %484 = vrot.lane.b32.xlu1 %v242_v15, %s1654_s28  ;;  %1399 = vmatmul.mubr.msk.f32.vlgmr.msra.gmra.mrb[0].mxu0 %vm853_vm9, %v833_v30  ;;  %v783_v44 = vsel %vm780_vm5, %v766_v5, %v519_v28  ;;  %v226_v28 = vld [vmem:[%s1760_s20 + $0xc0] sm:$0xff] }
  0xc8   : > { %436 = vrot.lane.b32.xlu0 %v1968_v16, %s1653_s27 }
  0xc9   : > { %v1988_v34 = vpop.permute.xlu1 %358 }
  0xca   : > { %v1990_v35 = vpop.permute.xlu0 %296  ;;  %v734_v27 = vsel %vm729_vm2, %v717_v26, %v1988_v34  ;;  %v268_v26 = vld [vmem:[%s1760_s20 + $0xda] sm:$0xff] }
  0xcb   : > { %680 = vrot.lane.b32.xlu1 %v262_v32, %s1658_s9 }
  0xcc   : > { %632 = vrot.lane.b32.xlu0 %v243_v33, %s1657_s5 }
  0xcd   : > { %v569_v36 = vpop.permute.xlu1 %568 }
  0xce   : > { %v521_v38 = vpop.permute.xlu0 %520  ;;  %v800_v50 = vsel %vm797_vm6, %v783_v44, %v569_v36 }
  0xcf   : > { %486 = vrot.lane.b32.xlu1 %v243_v33, %s1654_s28  ;;  %v784_v3 = vsel %vm780_vm5, %v767_v51, %v521_v38 }
  0xd0   : > { %310 = vrot.lane.b32.xlu0 %v242_v15, %s1652_s24 }
  0xd1   : > { %v1997_v40 = vpop.permute.xlu1 %422 }
  0xd2   : > { %v1999_v41 = vpop.permute.xlu0 %360  ;;  %v751_v30 = vsel %vm746_vm3, %v734_v27, %v1997_v40 }
  0xd3   : > { %682 = vrot.lane.b32.xlu1 %v263_v39, %s1658_s9 }
  0xd4   : > { %534 = vrot.lane.b32.xlu0 %v262_v32, %s1655_s29 }
  0xd5   : > { %v619_v42 = vpop.permute.xlu1 %618 }
  0xd6   : > { %v571_v45 = vpop.permute.xlu0 %570  ;;  %v817_v54 = vsel %vm814_vm7, %v800_v50, %v619_v42  ;;  %v718_v42 = vsel %vm712_vm1, %v1813_v17, %v1990_v35 }
  0xd7   : > { %374 = vrot.lane.b32.xlu1 %v262_v32, %s1651_s21  ;;  %v801_v56 = vsel %vm797_vm6, %v784_v3, %v571_v45  ;;  %v735_v45 = vsel %vm729_vm2, %v718_v42, %v1999_v41  ;;  %v229_v3 = vld [vmem:[%s1760_s20 + $0xe0] sm:$0xff] }
  0xd8   : > { %312 = vrot.lane.b32.xlu0 %v243_v33, %s1652_s24 }
  0xd9   : > { %v473_v52 = vpop.permute.xlu1 %472 }
  0xda   : > { %v2015_v53 = vpop.permute.xlu0 %424  ;;  %v768_v36 = vsel %vm763_vm4, %v751_v30, %v473_v52 }
  0xdb   : > { %584 = vrot.lane.b32.xlu1 %v2011_v48, %s1656_s8  ;;  %v752_v49 = vsel %vm746_vm3, %v735_v45, %v2015_v53 }
  0xdc   : > { %536 = vrot.lane.b32.xlu0 %v263_v39, %s1655_s29 }
  0xdd   : > { %v669_v55 = vpop.permute.xlu1 %668 }
  0xde   : > { %v621_v57 = vpop.permute.xlu0 %620  ;;  %v834_v58 = vsel %vm831_vm8, %v817_v54, %v669_v55  ;;  %v266_v55 = vld [vmem:[%s1760_s20 + $0xc2] sm:$0xff] }
  0xdf   : > { %438 = vrot.lane.b32.xlu1 %v2011_v48, %s1653_s27  ;;  %1401 = vmatprep.mubr.msk.f32.mxu0 %vm853_vm9, %v834_v58  ;;  %v818_v6 = vsel %vm814_vm7, %v801_v56, %v621_v57  ;;  %v247_v57 = vld [vmem:[%s1760_s20 + $0xc9] sm:$0xff]  ;;  %v228_v56 = vld [vmem:[%s1760_s20 + $0xd8] sm:$0xff] }
  0xe0   : > { %376 = vrot.lane.b32.xlu0 %v263_v39, %s1651_s21 }
  0xe1   : > { %v475_v2 = vpop.permute.xlu1 %474 }
  0xe2   : > { %v2041_v4 = vpop.permute.xlu0 %298  ;;  %v769_v17 = vsel %vm763_vm4, %v752_v49, %v475_v2 }
  0xe3   : > { %634 = vrot.lane.b32.xlu1 %v244_v61, %s1657_s5 }
  0xe4   : > { %586 = vrot.lane.b32.xlu0 %v2037_v63, %s1656_s8 }
  0xe5   : > { %v671_v7 = vpop.permute.xlu1 %670 }
  0xe6   : > { %v523_v1 = vpop.permute.xlu0 %522  ;;  %v835_v8 = vsel %vm831_vm8, %v818_v6, %v671_v7 }
  0xe7   : > { %488 = vrot.lane.b32.xlu1 %v244_v61, %s1654_s28  ;;  %1402 = vmatmul.mubr.msk.f32.gmra.mrb[2].mxu0 %vm853_vm9, %v835_v8  ;;  %v785_v9 = vsel %vm780_vm5, %v768_v36, %v523_v1  ;;  %v719_v1 = vsel %vm712_vm1, %v1836_v23, %v2041_v4  ;;  %v269_v4 = vld [vmem:[%s1760_s20 + $0xe2] sm:$0xff] }
  0xe8   : > { %440 = vrot.lane.b32.xlu0 %v2037_v63, %s1653_s27 }
  0xe9   : > { %v2057_v12 = vpop.permute.xlu1 %362 }
  0xea   : > { %v2059_v13 = vpop.permute.xlu0 %300  ;;  %v736_v8 = vsel %vm729_vm2, %v719_v1, %v2057_v12 }
  0xeb   : > { %684 = vrot.lane.b32.xlu1 %v264_v10, %s1658_s9  ;;  %v720_v30 = vsel %vm712_vm1, %v1846_v25, %v2059_v13 }
  0xec   : > { %636 = vrot.lane.b32.xlu0 %v245_v11, %s1657_s5 }
  0xed   : > { %v573_v14 = vpop.permute.xlu1 %572 }
  0xee   : > { %v525_v15 = vpop.permute.xlu0 %524  ;;  %v802_v20 = vsel %vm797_vm6, %v785_v9, %v573_v14 }
  0xef   : > { %490 = vrot.lane.b32.xlu1 %v245_v11, %s1654_s28  ;;  %v786_v35 = vsel %vm780_vm5, %v769_v17, %v525_v15 }
  0xf0   : > { %314 = vrot.lane.b32.xlu0 %v244_v61, %s1652_s24 }
  0xf1   : > { %v2066_v19 = vpop.permute.xlu1 %426 }
  0xf2   : > { %v2068_v21 = vpop.permute.xlu0 %364  ;;  %v753_v14 = vsel %vm746_vm3, %v736_v8, %v2066_v19 }
  0xf3   : > { %686 = vrot.lane.b32.xlu1 %v265_v18, %s1658_s9 }
  0xf4   : > { %538 = vrot.lane.b32.xlu0 %v264_v10, %s1655_s29 }
  0xf5   : > { %v623_v22 = vpop.permute.xlu1 %622 }
  0xf6   : > { %v575_v24 = vpop.permute.xlu0 %574  ;;  %v819_v34 = vsel %vm814_vm7, %v802_v20, %v623_v22 }
  0xf7   : > { %378 = vrot.lane.b32.xlu1 %v264_v10, %s1651_s21  ;;  %v803_v41 = vsel %vm797_vm6, %v786_v35, %v575_v24  ;;  %v249_v10 = vld [vmem:[%s1760_s20 + $0xe1] sm:$0xff] }
  0xf8   : > { %316 = vrot.lane.b32.xlu0 %v245_v11, %s1652_s24  ;;  %v248_v11 = vld [vmem:[%s1760_s20 + $0xd9] sm:$0xff]  ;;  %s2252_s20 = sand.u32 1, %s1625_s13  }
  0xf9   : > { %v477_v32 = vpop.permute.xlu1 %476  ;;  %s1338_s24 = sshll.u32 %s2252_s20, 7  ;;  %s1179_s7 = scalar_lea.sflag [#allocation3], %s2252_s20 }
  0xfa   : > { %v2082_v33 = vpop.permute.xlu0 %428  ;;  %v770_v22 = vsel %vm763_vm4, %v753_v14, %v477_v32  ;;  %v737_v32 = vsel %vm729_vm2, %v720_v30, %v2068_v21 }
  0xfb   : > { %588 = vrot.lane.b32.xlu1 %v226_v28, %s1656_s8  ;;  %v754_v36 = vsel %vm746_vm3, %v737_v32, %v2082_v33 }
  0xfc   : > { %540 = vrot.lane.b32.xlu0 %v265_v18, %s1655_s29 }
  0xfd   : > { %v673_v38 = vpop.permute.xlu1 %672 }
  0xfe   : > { %v625_v39 = vpop.permute.xlu0 %624  ;;  %v836_v40 = vsel %vm831_vm8, %v819_v34, %v673_v38 }
  0xff   : > { %442 = vrot.lane.b32.xlu1 %v226_v28, %s1653_s27  ;;  %1404 = vmatprep.mubr.msk.f32.mxu0 %vm853_vm9, %v836_v40  ;;  %v820_v44 = vsel %vm814_vm7, %v803_v41, %v625_v39 }
 0x100   : > { %380 = vrot.lane.b32.xlu0 %v265_v18, %s1651_s21 }
 0x101   : > { %v479_v52 = vpop.permute.xlu1 %478 }
 0x102   : > { %v2103_v5 = vpop.permute.xlu0 %302  ;;  %v771_v34 = vsel %vm763_vm4, %v754_v36, %v479_v52 }
 0x103   : > { %638 = vrot.lane.b32.xlu1 %v246_v46, %s1657_s5  ;;  %v721_v35 = vsel %vm712_vm1, %v1866_v29, %v2103_v5 }
 0x104   : > { %590 = vrot.lane.b32.xlu0 %v227_v47, %s1656_s8 }
 0x105   : > { %v675_v50 = vpop.permute.xlu1 %674 }
 0x106   : > { %v527_v54 = vpop.permute.xlu0 %526  ;;  %v837_v53 = vsel %vm831_vm8, %v820_v44, %v675_v50 }
 0x107   : > { %492 = vrot.lane.b32.xlu1 %v246_v46, %s1654_s28  ;;  %1405 = vmatmul.mubr.msk.f32.gmra.mrb[4].mxu0 %vm853_vm9, %v837_v53  ;;  %v787_v24 = vsel %vm780_vm5, %v770_v22, %v527_v54 }
 0x108   : > { %444 = vrot.lane.b32.xlu0 %v227_v47, %s1653_s27  ;;  %s2258_s27 = scalar_lea.vmem [#allocation2], %s1338_s24  ;;  %s1659_s24 = smov [#allocation2]  }
 0x109   : > { %v2117_v58 = vpop.permute.xlu1 %366  ;;  %s1199_s10 = sshll.u32 %s2258_s27, 4  ;;  %s2359_s10 = int_to_ptr.vmem [resolvable:$true] %s1199_s10 }
 0x10a   : > { %v2119_v59 = vpop.permute.xlu0 %304  ;;  %v738_v41 = vsel %vm729_vm2, %v721_v35, %v2117_v58 }
 0x10b   : > { %688 = vrot.lane.b32.xlu1 %v266_v55, %s1658_s9  ;;  %v722_v29 = vsel %vm712_vm1, %v1876_v31, %v2119_v59 }
 0x10c   : > { %640 = vrot.lane.b32.xlu0 %v247_v57, %s1657_s5 }
 0x10d   : > { %v577_v60 = vpop.permute.xlu1 %576 }
 0x10e   : > { %v529_v61 = vpop.permute.xlu0 %528  ;;  %v804_v23 = vsel %vm797_vm6, %v787_v24, %v577_v60 }
 0x10f   : > { %542 = vrot.lane.b32.xlu1 %v266_v55, %s1655_s29  ;;  %v788_v38 = vsel %vm780_vm5, %v771_v34, %v529_v61 }
 0x110   : > { %494 = vrot.lane.b32.xlu0 %v247_v57, %s1654_s28  ;;  %s1360_s28 = sshll.u32 %s1633_s15, 4 }
 0x111   : > { %v431_v2 = vpop.permute.xlu1 %430 }
 0x112   : > { %v2126_v51 = vpop.permute.xlu0 %368  ;;  %v755_v44 = vsel %vm746_vm3, %v738_v41, %v431_v2 }
 0x113   : > { %544 = vrot.lane.b32.xlu1 %v267_v0, %s1655_s29  ;;  %v739_v5 = vsel %vm729_vm2, %v722_v29, %v2126_v51  ;;  %s1361_s29 = sshll.u32 %s1637_s16, 5 }
 0x114   : > { %690 = vrot.lane.b32.xlu0 %v267_v0, %s1658_s9 }
 0x115   : > { %v627_v6 = vpop.permute.xlu1 %626 }
 0x116   : > { %v579_v7 = vpop.permute.xlu0 %578  ;;  %v821_v12 = vsel %vm814_vm7, %v804_v23, %v627_v6 }
 0x117   : > { %594 = vrot.lane.b32.xlu1 %v229_v3, %s1656_s8  ;;  %v805_v25 = vsel %vm797_vm6, %v788_v38, %v579_v7 }
 0x118   : > { %592 = vrot.lane.b32.xlu0 %v228_v56, %s1656_s8  ;;  %s1196_s8 = sadd.s32 %s1361_s29, %s1360_s28  ;;  %s1527_s28 = sshll.u32 %s1659_s24, 4  ;;  %s1528_s28 = int_to_ptr.vmem [resolvable:$false] %s1527_s28 }
 0x119   : > { %v481_v15 = vpop.permute.xlu1 %480  ;;  %s1362_s11 = sshll.u32 %s1196_s8, 7  ;;  %s1529_s29 = scalar_lea.vmem %s1528_s28, 4096 }
 0x11a   : > { %v433_v18 = vpop.permute.xlu0 %432  ;;  %v772_v53 = vsel %vm763_vm4, %v755_v44, %v481_v15  ;;  %s2364_s6 = scalar_lea.hbm %s2493_s2, %s1362_s11  ;;  %p1530_p4 = scmp.lt.s32.totalorder %s2359_s10, %s1528_s28 }
 0x11b   : > { %644 = vrot.lane.b32.xlu1 %v249_v10, %s1657_s5  ;;  %v756_v58 = vsel %vm746_vm3, %v739_v5, %v433_v18 }
 0x11c   : > { %642 = vrot.lane.b32.xlu0 %v248_v11, %s1657_s5 }
 0x11d   : > { %v677_v27 = vpop.permute.xlu1 %676 }
 0x11e   : > { %v629_v28 = vpop.permute.xlu0 %628  ;;  %v838_v19 = vsel %vm831_vm8, %v821_v12, %v677_v27 }
 0x11f   : > { %694 = vrot.lane.b32.xlu1 %v269_v4, %s1658_s9  ;;  %1407 = vmatprep.mubr.msk.f32.mxu0 %vm853_vm9, %v838_v19  ;;  %v822_v13 = vsel %vm814_vm7, %v805_v25, %v629_v28 }
 0x120   : > { %692 = vrot.lane.b32.xlu0 %v268_v26, %s1658_s9  ;;  %s1523_s9 = scalar_lea.vmem %s2359_s10, 2048 }
 0x121   : > { %v483_v9 = vpop.permute.xlu1 %482  ;;  %p1524_p0 = scmp.ne.s32.totalorder %s2359_s10, %s1523_s9  ;;  %p1531_p5 = scmp.lt.s32.totalorder %s1529_s29, %s1523_s9 }
 0x122   : > { %v307_v20 = vpop.permute.xlu0 %306  ;;  %v773_v6 = vsel %vm763_vm4, %v756_v58, %v483_v9 }
 0x123   : > { %v723_v4 = vsel %vm712_vm1, %v1896_v37, %v307_v20  ;;  %p1525_p1 = pnand %p1524_p0, %p1733_p3  ;;  %p1532_p6 = por %p1531_p5, %p1530_p4 }
 0x125   : > { %v679_v39 = vpop.permute.xlu1 %678  ;;  %p1526_p2 = pneg %p1525_p1 }
 0x126   : > { %v531_v40 = vpop.permute.xlu0 %530  ;;  %v839_v42 = vsel %vm831_vm8, %v822_v13, %v679_v39 }
 0x127   : > { %1408 = vmatmul.mubr.msk.f32.gmra.mrb[6].mxu0 %vm853_vm9, %v839_v42  ;;  %v789_v55 = vsel %vm780_vm5, %v772_v53, %v531_v40  ;;  %p1533_p7 = pnand %p1532_p6, %p1526_p2 }
 0x129   : > { %v371_v21 = vpop.permute.xlu1 %370 }
 0x12a   : > { %v309_v45 = vpop.permute.xlu0 %308  ;;  %v740_v26 = vsel %vm729_vm2, %v723_v4, %v371_v21 }
 0x12b   : > { %v724_v37 = vsel %vm712_vm1, %v1910_v43, %v309_v45 }
 0x12d   : > { %v581_v46 = vpop.permute.xlu1 %580 }
 0x12e   : > { %v533_v33 = vpop.permute.xlu0 %532  ;;  %v806_v57 = vsel %vm797_vm6, %v789_v55, %v581_v46 }
 0x12f   : > { %v790_v7 = vsel %vm780_vm5, %v773_v6, %v533_v33 }
 0x131   : > { %v435_v47 = vpop.permute.xlu1 %434 }
 0x132   : > { %v373_v49 = vpop.permute.xlu0 %372  ;;  %v757_v12 = vsel %vm746_vm3, %v740_v26, %v435_v47 }
 0x133   : > { %v741_v20 = vsel %vm729_vm2, %v724_v37, %v373_v49 }
 0x135   : > { %v631_v17 = vpop.permute.xlu1 %630 }
 0x136   : > { %v583_v52 = vpop.permute.xlu0 %582  ;;  %v823_v60 = vsel %vm814_vm7, %v806_v57, %v631_v17 }
 0x137   : > { %v807_v1 = vsel %vm797_vm6, %v790_v7, %v583_v52 }
 0x139   : > { %v485_v50 = vpop.permute.xlu1 %484 }
 0x13a   : > { %v437_v54 = vpop.permute.xlu0 %436  ;;  %v774_v19 = vsel %vm763_vm4, %v757_v12, %v485_v50 }
 0x13b   : > { %v758_v25 = vsel %vm746_vm3, %v741_v20, %v437_v54 }
 0x13d   : > { %v681_v61 = vpop.permute.xlu1 %680 }
 0x13e   : > { %v633_v0 = vpop.permute.xlu0 %632  ;;  %v840_v3 = vsel %vm831_vm8, %v823_v60, %v681_v61 }
 0x13f   : > { %1410 = vmatprep.mubr.msk.f32.mxu1 %vm853_vm9, %v840_v3  ;;  %v824_v8 = vsel %vm814_vm7, %v807_v1, %v633_v0 }
 0x141   : > { %v487_v2 = vpop.permute.xlu1 %486 }
 0x142   : > { %v311_v56 = vpop.permute.xlu0 %310  ;;  %v775_v40 = vsel %vm763_vm4, %v758_v25, %v487_v2 }
 0x143   : > { %v725_v54 = vsel %vm712_vm1, %v1943_v62, %v311_v56 }
 0x145   : > { %v683_v10 = vpop.permute.xlu1 %682 }
 0x146   : > { %v535_v11 = vpop.permute.xlu0 %534  ;;  %v841_v31 = vsel %vm831_vm8, %v824_v8, %v683_v10 }
 0x147   : > { %1411 = vmatmul.mubr.msk.f32.vlgmr.msra.gmra.mrb[0].mxu1 %vm853_vm9, %v841_v31  ;;  %v791_v30 = vsel %vm780_vm5, %v774_v19, %v535_v11 }
 0x149   : > { %v375_v59 = vpop.permute.xlu1 %374 }
 0x14a   : > { %v313_v51 = vpop.permute.xlu0 %312  ;;  %v742_v53 = vsel %vm729_vm2, %v725_v54, %v375_v59 }
 0x14b   : > { %v726_v62 = vsel %vm712_vm1, %v1968_v16, %v313_v51 }
 0x14d   : > { %v585_v14 = vpop.permute.xlu1 %584 }
 0x14e   : > { %v537_v15 = vpop.permute.xlu0 %536  ;;  %v808_v32 = vsel %vm797_vm6, %v791_v30, %v585_v14 }
 0x14f   : > { %v792_v42 = vsel %vm780_vm5, %v775_v40, %v537_v15 }
 0x151   : > { %v439_v18 = vpop.permute.xlu1 %438 }
 0x152   : > { %v377_v22 = vpop.permute.xlu0 %376  ;;  %v759_v55 = vsel %vm746_vm3, %v742_v53, %v439_v18 }
 0x153   : > { %v743_v56 = vsel %vm729_vm2, %v726_v62, %v377_v22 }
 0x155   : > { %v635_v24 = vpop.permute.xlu1 %634 }
 0x156   : > { %v587_v23 = vpop.permute.xlu0 %586  ;;  %v825_v36 = vsel %vm814_vm7, %v808_v32, %v635_v24 }
 0x157   : > { %v809_v21 = vsel %vm797_vm6, %v792_v42, %v587_v23 }
 0x159   : > { %v489_v27 = vpop.permute.xlu1 %488 }
 0x15a   : > { %v441_v28 = vpop.permute.xlu0 %440  ;;  %v776_v61 = vsel %vm763_vm4, %v759_v55, %v489_v27 }
 0x15b   : > { %v760_v6 = vsel %vm746_vm3, %v743_v56, %v441_v28 }
 0x15d   : > { %v685_v9 = vpop.permute.xlu1 %684 }
 0x15e   : > { %v637_v34 = vpop.permute.xlu0 %636  ;;  %v842_v38 = vsel %vm831_vm8, %v825_v36, %v685_v9 }
 0x15f   : > { %1413 = vmatprep.mubr.msk.f32.mxu1 %vm853_vm9, %v842_v38  ;;  %v826_v46 = vsel %vm814_vm7, %v809_v21, %v637_v34 }
 0x161   : > { %v491_v13 = vpop.permute.xlu1 %490 }
 0x162   : > { %v315_v39 = vpop.permute.xlu0 %314  ;;  %v777_v8 = vsel %vm763_vm4, %v760_v6, %v491_v13 }
 0x163   : > { %v727_v18 = vsel %vm712_vm1, %v2011_v48, %v315_v39 }
 0x165   : > { %v687_v33 = vpop.permute.xlu1 %686 }
 0x166   : > { %v539_v47 = vpop.permute.xlu0 %538  ;;  %v843_v43 = vsel %vm831_vm8, %v826_v46, %v687_v33 }
 0x167   : > { %1414 = vmatmul.mubr.msk.f32.gmra.mrb[2].mxu1 %vm853_vm9, %v843_v43  ;;  %v793_v0 = vsel %vm780_vm5, %v776_v61, %v539_v47 }
 0x169   : > { %v379_v45 = vpop.permute.xlu1 %378 }
 0x16a   : > { %v317_v49 = vpop.permute.xlu0 %316  ;;  %v744_v24 = vsel %vm729_vm2, %v727_v18, %v379_v45 }
 0x16b   : > { %v728_v22 = vsel %vm712_vm1, %v2037_v63, %v317_v49 }
 0x16d   : > { %v589_v17 = vpop.permute.xlu1 %588 }
 0x16e   : > { %v541_v52 = vpop.permute.xlu0 %540  ;;  %v810_v3 = vsel %vm797_vm6, %v793_v0, %v589_v17 }
 0x16f   : > { %v794_v10 = vsel %vm780_vm5, %v777_v8, %v541_v52 }
 0x171   : > { %v443_v35 = vpop.permute.xlu1 %442 }
 0x172   : > { %v381_v41 = vpop.permute.xlu0 %380  ;;  %v761_v4 = vsel %vm746_vm3, %v744_v24, %v443_v35 }
 0x173   : > { %v745_v23 = vsel %vm729_vm2, %v728_v22, %v381_v41 }
 0x175   : > { %v639_v44 = vpop.permute.xlu1 %638 }
 0x176   : > { %v591_v50 = vpop.permute.xlu0 %590  ;;  %v827_v29 = vsel %vm814_vm7, %v810_v3, %v639_v44 }
 0x177   : > { %v811_v11 = vsel %vm797_vm6, %v794_v10, %v591_v50 }
 0x179   : > { %v493_v57 = vpop.permute.xlu1 %492 }
 0x17a   : > { %v445_v60 = vpop.permute.xlu0 %444  ;;  %v778_v28 = vsel %vm763_vm4, %v761_v4, %v493_v57 }
 0x17b   : > { %v762_v26 = vsel %vm746_vm3, %v745_v23, %v445_v60 }
 0x17d   : > { %v689_v5 = vpop.permute.xlu1 %688 }
 0x17e   : > { %v641_v58 = vpop.permute.xlu0 %640  ;;  %v844_v2 = vsel %vm831_vm8, %v827_v29, %v689_v5 }
 0x17f   : > { %1416 = vmatprep.mubr.msk.f32.mxu1 %vm853_vm9, %v844_v2  ;;  %v828_v31 = vsel %vm814_vm7, %v811_v11, %v641_v58 }
 0x181   : > { %v543_v7 = vpop.permute.xlu1 %542 }
 0x182   : > { %v495_v1 = vpop.permute.xlu0 %494  ;;  %v795_v48 = vsel %vm780_vm5, %v778_v28, %v543_v7 }
 0x183   : > { %v779_v19 = vsel %vm763_vm4, %v762_v26, %v495_v1 }
 0x185   : > { %v545_v59 = vpop.permute.xlu1 %544 }
 0x186   : > { %v691_v14 = vpop.permute.xlu0 %690  ;;  %v796_v30 = vsel %vm780_vm5, %v779_v19, %v545_v59 }
 0x187   : > { %v845_v16 = vsel %vm831_vm8, %v828_v31, %v691_v14 }
 0x188   : > { %1417 = vmatmul.mubr.msk.f32.gmra.mrb[4].mxu1 %vm853_vm9, %v845_v16 }
 0x189   : > { %v595_v51 = vpop.permute.xlu1 %594 }
 0x18a   : > { %v593_v15 = vpop.permute.xlu0 %592  ;;  %v813_v63 = vsel %vm797_vm6, %v796_v30, %v595_v51 }
 0x18b   : > { %v812_v32 = vsel %vm797_vm6, %v795_v48, %v593_v15 }
 0x18d   : > { %v645_v12 = vpop.permute.xlu1 %644 }
 0x18e   : > { %v643_v27 = vpop.permute.xlu0 %642  ;;  %v830_v36 = vsel %vm814_vm7, %v813_v63, %v645_v12 }
 0x18f   : > { %v829_v9 = vsel %vm814_vm7, %v812_v32, %v643_v27 }
 0x191   : > { %v695_v34 = vpop.permute.xlu1 %694 }
 0x192   : > { %v693_v38 = vpop.permute.xlu0 %692  ;;  %v847_v37 = vsel %vm831_vm8, %v830_v36, %v695_v34 }
 0x193   : > { %v846_v20 = vsel %vm831_vm8, %v829_v9, %v693_v38 }
 0x194   : > { %1419 = vmatprep.mubr.msk.f32.mxu1 %vm853_vm9, %v846_v20 }
 0x195   : > { %1420 = vmatmul.mubr.msk.f32.gmra.mrb[6].mxu1 %vm853_vm9, %v847_v37 }
 0x19a   : > { %v2256_v25 = vpop.f32.mrb[0].mxu0 }
 0x19b   : > { %1052 = vst.msk [vmem:[%s2258_s27 + $0x8] sm:$0xff] %vm831_vm8, %v2256_v25  ;;  %v1068_v13 = vsel %vm831_vm8, %v2256_v25, 0.0  ;;  %v2265_v39 = vpop.f32.mrb[1].mxu0 }
 0x19c   : > { %1051 = vst.msk [vmem:[%s2258_s27] sm:$0xff] %vm831_vm8, %v2265_v39  ;;  %v1067_v40 = vsel %vm831_vm8, %v2265_v39, 0.0 }
 0x19d   : > { %v1069_v42 = vadd.f32 %v1068_v13, %v1067_v40 }
 0x1ba   : > { %v2272_v21 = vpop.f32.mrb[2].mxu0 }
 0x1bb   : > { %1054 = vst.msk [vmem:[%s2258_s27 + $0x18] sm:$0xff] %vm831_vm8, %v2272_v21  ;;  %v2277_v46 = vpop.f32.mrb[3].mxu0  ;;  %v1072_v43 = vsel %vm831_vm8, %v2272_v21, 0.0 }
 0x1bc   : > { %1053 = vst.msk [vmem:[%s2258_s27 + $0x10] sm:$0xff] %vm831_vm8, %v2277_v46  ;;  %v1070_v33 = vsel %vm831_vm8, %v2277_v46, 0.0 }
 0x1bd   : > { %v1071_v47 = vadd.f32 %v1070_v33, %v1069_v42 }
 0x1bf   : > { %v1073_v45 = vadd.f32 %v1072_v43, %v1071_v47 }
 0x1da   : > { %v2286_v49 = vpop.f32.mrb[4].mxu0 }
 0x1db   : > { %1056 = vst.msk [vmem:[%s2258_s27 + $0x28] sm:$0xff] %vm831_vm8, %v2286_v49  ;;  %v2291_v17 = vpop.f32.mrb[5].mxu0  ;;  %v1076_v41 = vsel %vm831_vm8, %v2286_v49, 0.0 }
 0x1dc   : > { %1055 = vst.msk [vmem:[%s2258_s27 + $0x20] sm:$0xff] %vm831_vm8, %v2291_v17  ;;  %v1074_v52 = vsel %vm831_vm8, %v2291_v17, 0.0 }
 0x1dd   : > { %v1075_v35 = vadd.f32 %v1074_v52, %v1073_v45 }
 0x1df   : > { %v1077_v44 = vadd.f32 %v1076_v41, %v1075_v35 }
 0x1fa   : > { %v2300_v50 = vpop.f32.mrb[6].mxu0 }
 0x1fb   : > { %1058 = vst.msk [vmem:[%s2258_s27 + $0x38] sm:$0xff] %vm831_vm8, %v2300_v50  ;;  %v2305_v54 = vpop.f32.mrb[7].mxu0  ;;  %v1080_v57 = vsel %vm831_vm8, %v2300_v50, 0.0 }
 0x1fc   : > { %1057 = vst.msk [vmem:[%s2258_s27 + $0x30] sm:$0xff] %vm831_vm8, %v2305_v54  ;;  %v1078_v53 = vsel %vm831_vm8, %v2305_v54, 0.0 }
 0x1fd   : > { %v1079_v55 = vadd.f32 %v1078_v53, %v1077_v44 }
 0x1ff   : > { %v1081_v60 = vadd.f32 %v1080_v57, %v1079_v55 }
 0x21a   : > { %v2314_v61 = vpop.f32.mrb[0].mxu1 }
 0x21b   : > { %1060 = vst.msk [vmem:[%s2258_s27 + $0x48] sm:$0xff] %vm831_vm8, %v2314_v61  ;;  %v2319_v0 = vpop.f32.mrb[1].mxu1  ;;  %v1084_v5 = vsel %vm831_vm8, %v2314_v61, 0.0 }
 0x21c   : > { %1059 = vst.msk [vmem:[%s2258_s27 + $0x40] sm:$0xff] %vm831_vm8, %v2319_v0  ;;  %v1082_v3 = vsel %vm831_vm8, %v2319_v0, 0.0 }
 0x21d   : > { %v1083_v29 = vadd.f32 %v1082_v3, %v1081_v60 }
 0x21f   : > { %v1085_v58 = vadd.f32 %v1084_v5, %v1083_v29 }
 0x23a   : > { %v2328_v2 = vpop.f32.mrb[2].mxu1 }
 0x23b   : > { %1062 = vst.msk [vmem:[%s2258_s27 + $0x58] sm:$0xff] %vm831_vm8, %v2328_v2  ;;  %v2333_v62 = vpop.f32.mrb[3].mxu1  ;;  %v1088_v7 = vsel %vm831_vm8, %v2328_v2, 0.0 }
 0x23c   : > { %1061 = vst.msk [vmem:[%s2258_s27 + $0x50] sm:$0xff] %vm831_vm8, %v2333_v62  ;;  %v1086_v56 = vsel %vm831_vm8, %v2333_v62, 0.0 }
 0x23d   : > { %v1087_v6 = vadd.f32 %v1086_v56, %v1085_v58 }
 0x23f   : > { %v1089_v1 = vadd.f32 %v1088_v7, %v1087_v6 }
 0x25b   : > { %v2342_v8 = vpop.f32.mrb[4].mxu1 }
 0x25c   : > { %1064 = vst.msk [vmem:[%s2258_s27 + $0x68] sm:$0xff] %vm831_vm8, %v2342_v8  ;;  %v2347_v10 = vpop.f32.mrb[5].mxu1  ;;  %v1092_v59 = vsel %vm831_vm8, %v2342_v8, 0.0 }
 0x25d   : > { %1063 = vst.msk [vmem:[%s2258_s27 + $0x60] sm:$0xff] %vm831_vm8, %v2347_v10  ;;  %v1090_v11 = vsel %vm831_vm8, %v2347_v10, 0.0 }
 0x25e   : > { %v1091_v31 = vadd.f32 %v1090_v11, %v1089_v1 }
 0x260   : > { %v1093_v14 = vadd.f32 %v1092_v59, %v1091_v31 }
 0x268   : > { %v1421_v16 = vpop.f32.mrb[6].mxu1 }
 0x269   : > { %1066 = vst.msk [vmem:[%s2258_s27 + $0x78] sm:$0xff] %vm831_vm8, %v1421_v16  ;;  %v1042_v51 = vpop.f32.mrb[7].mxu1 }
 0x26a   : > { %1065 = vst.msk [vmem:[%s2258_s27 + $0x70] sm:$0xff] %vm831_vm8, %v1042_v51  ;;  %v1094_v15 = vsel %vm831_vm8, %v1042_v51, 0.0 }
 0x26b   : > { %v1095_v18 = vadd.f32 %v1094_v15, %v1093_v14 }
 0x26c   : > { %1536 = shalt.err (!%p1533_p7)
}
 0x26d   : > { %s1537_s27 = scalar_lea.hbm %s2364_s6, 2048  ;;  %s1541_s4 = scalar_lea.hbm %s2493_s2, 8192 }
 0x26e   : > { %p1538_p9 = scmp.ne.s32.totalorder %s2364_s6, %s1537_s27  ;;  %p1542_p12 = scmp.lt.u32.totalorder %s2364_s6, %s2493_s2 }
 0x26f   : > { %p1543_p13 = scmp.lt.u32.totalorder %s1541_s4, %s1537_s27  ;;  %p1545_p1 = scmp.lt.u32.totalorder %s1537_s27, %s2364_s6 }
 0x270   : > { %p1539_p10 = pnand %p1538_p9, %p1733_p3 }
 0x271   : > { %p1544_p0 = por %p1543_p13, %p1542_p12 }
 0x272   : > { %p1540_p11 = pneg %p1539_p10 }
 0x273   : > { %p1546_p2 = por %p1545_p1, %p1544_p0 }
 0x275   : > { %p1547_p4 = pnand %p1546_p2, %p1540_p11 }
 0x277   : > { %1550 = shalt.err (!%p1547_p4)
}
 0x278   : > { %s1660_s9 = smov 128   ;;  %v1096_v22 = vsel %vm831_vm8, %v1421_v16, 0.0  ;;  %vm1174_vm10 = vcmask 1040384   ;;  %vm1176_vm11 = vcmask 254976   ;;  %s1661_s4 = smov [#allocation4]  }
 0x279   : > { %1438 = dma.vmem_to_hbm [thread:$0]  (%p1733_p3), %s2359_s10, 2048, %s2364_s6, %s1179_s7, %s1660_s9, %s1660_s9, %s1651_s21   ;;  %v1097_v24 = vadd.f32 %v1096_v22, %v1095_v18 }
 0x27a   : > { %s1339_s21 = sshll.u32 %s2252_s20, 1  ;;  %s1363_s10 = sshll.u32 %s1637_s16, 1 }
 0x27b   : > { %v1098_v23 = vrot.slane %v1097_v24, 4  ;;  %s1213_s6 = sadd.s32 %s1633_s15, %s1363_s10  ;;  %s200_s28 = scalar_lea.vmem [#allocation4], %s1339_s21 }
 0x27c   : > { %s1364_s7 = sshll.u32 %s1213_s6, 5  ;;  %s1217_s29 = sshll.u32 %s200_s28, 4  ;;  %s2438_s29 = int_to_ptr.vmem [resolvable:$true] %s1217_s29 }
 0x27d   : > { %v1099_v4 = vadd.f32 %v1098_v23, %v1097_v24  ;;  %s2436_s11 = scalar_lea.hbm %s2494_s3, %s1364_s7  ;;  %s1184_s15 = scalar_lea.sflag [#allocation5], %s2252_s20 }
 0x27e   : > { %s1551_s16 = scalar_lea.vmem %s2438_s29, 32  ;;  %s1555_s5 = sshll.u32 %s1661_s4, 4  ;;  %s1556_s5 = int_to_ptr.vmem [resolvable:$false] %s1555_s5 }
 0x27f   : > { %v1100_v26 = vrot.slane %v1099_v4, 2  ;;  %p1552_p5 = scmp.ne.s32.totalorder %s2438_s29, %s1551_s16  ;;  %s1557_s24 = scalar_lea.vmem %s1556_s5, 64 }
 0x280   : > { %p1558_p9 = scmp.lt.s32.totalorder %s2438_s29, %s1556_s5  ;;  %p1559_p10 = scmp.lt.s32.totalorder %s1557_s24, %s1551_s16 }
 0x281   : > { %v1101_v12 = vadd.f32 %v1100_v26, %v1099_v4  ;;  %p1553_p6 = pnand %p1552_p5, %p1733_p3 }
 0x282   : > { %p1560_p11 = por %p1559_p10, %p1558_p9 }
 0x283   : > { %v1102_v27 = vrot.slane %v1101_v12, 1  ;;  %p1554_p7 = pneg %p1553_p6 }
 0x285   : > { %v2397_v28 = vadd.f32 %v1102_v27, %v1101_v12  ;;  %p1561_p12 = pnand %p1560_p11, %p1554_p7 }
 0x287   : > { %v1104_v19 = vmul.f32 0.0078125, %v2397_v28 }
 0x289   : > { %v1105_v48 = vsub.f32 %v2265_v39, %v1104_v19  ;;  %v1106_v30 = vsub.f32 %v2256_v25, %v1104_v19  ;;  %v1107_v63 = vsub.f32 %v2277_v46, %v1104_v19  ;;  %v1108_v32 = vsub.f32 %v2272_v21, %v1104_v19 }
 0x28a   : > { %v1109_v36 = vsub.f32 %v2291_v17, %v1104_v19  ;;  %v1110_v9 = vsub.f32 %v2286_v49, %v1104_v19  ;;  %v1111_v34 = vsub.f32 %v2305_v54, %v1104_v19  ;;  %v1112_v38 = vsub.f32 %v2300_v50, %v1104_v19 }
 0x28b   : > { %v1113_v37 = vsub.f32 %v2319_v0, %v1104_v19  ;;  %v1114_v20 = vsub.f32 %v2314_v61, %v1104_v19  ;;  %v1115_v13 = vsub.f32 %v2333_v62, %v1104_v19  ;;  %v1116_v25 = vsub.f32 %v2328_v2, %v1104_v19 }
 0x28c   : > { %v1117_v39 = vsub.f32 %v2347_v10, %v1104_v19  ;;  %v1118_v40 = vsub.f32 %v2342_v8, %v1104_v19  ;;  %v1119_v42 = vsub.f32 %v1042_v51, %v1104_v19  ;;  %v1120_v21 = vsub.f32 %v1421_v16, %v1104_v19 }
 0x28d   : > { %v1121_v46 = vmul.f32 %v1105_v48, %v1105_v48  ;;  %v1122_v33 = vmul.f32 %v1106_v30, %v1106_v30  ;;  %v1123_v47 = vmul.f32 %v1107_v63, %v1107_v63  ;;  %v1124_v43 = vmul.f32 %v1108_v32, %v1108_v32 }
 0x28e   : > { %v1125_v52 = vmul.f32 %v1109_v36, %v1109_v36  ;;  %v1126_v44 = vmul.f32 %v1110_v9, %v1110_v9  ;;  %v1127_v53 = vmul.f32 %v1111_v34, %v1111_v34  ;;  %v1128_v60 = vmul.f32 %v1112_v38, %v1112_v38 }
 0x28f   : > { %v1137_v45 = vsel %vm831_vm8, %v1121_v46, 0.0  ;;  %v1138_v49 = vsel %vm831_vm8, %v1122_v33, 0.0  ;;  %v1140_v35 = vsel %vm831_vm8, %v1123_v47, 0.0  ;;  %v1142_v50 = vsel %vm831_vm8, %v1124_v43, 0.0 }
 0x290   : > { %v1139_v17 = vadd.f32 %v1138_v49, %v1137_v45  ;;  %v1144_v55 = vsel %vm831_vm8, %v1125_v52, 0.0  ;;  %v1146_v61 = vsel %vm831_vm8, %v1126_v44, 0.0  ;;  %v1129_v3 = vmul.f32 %v1113_v37, %v1113_v37 }
 0x291   : > { %v1148_v29 = vsel %vm831_vm8, %v1127_v53, 0.0  ;;  %v1130_v58 = vmul.f32 %v1114_v20, %v1114_v20  ;;  %v1150_v2 = vsel %vm831_vm8, %v1128_v60, 0.0  ;;  %v1131_v56 = vmul.f32 %v1115_v13, %v1115_v13 }
 0x292   : > { %v1141_v41 = vadd.f32 %v1140_v35, %v1139_v17  ;;  %v1152_v6 = vsel %vm831_vm8, %v1129_v3, 0.0  ;;  %v1132_v1 = vmul.f32 %v1116_v25, %v1116_v25  ;;  %v1133_v11 = vmul.f32 %v1117_v39, %v1117_v39 }
 0x293   : > { %v1154_v8 = vsel %vm831_vm8, %v1130_v58, 0.0  ;;  %v1156_v31 = vsel %vm831_vm8, %v1131_v56, 0.0  ;;  %v1134_v14 = vmul.f32 %v1118_v40, %v1118_v40  ;;  %v1135_v15 = vmul.f32 %v1119_v42, %v1119_v42 }
 0x294   : > { %v1143_v54 = vadd.f32 %v1142_v50, %v1141_v41  ;;  %v1158_v16 = vsel %vm831_vm8, %v1132_v1, 0.0  ;;  %v1160_v18 = vsel %vm831_vm8, %v1133_v11, 0.0  ;;  %v1136_v24 = vmul.f32 %v1120_v21, %v1120_v21 }
 0x295   : > { %v1162_v23 = vsel %vm831_vm8, %v1134_v14, 0.0  ;;  %v1164_v26 = vsel %vm831_vm8, %v1135_v15, 0.0 }
 0x296   : > { %v1145_v57 = vadd.f32 %v1144_v55, %v1143_v54  ;;  %v1166_v27 = vsel %vm831_vm8, %v1136_v24, 0.0 }
 0x298   : > { %v1147_v0 = vadd.f32 %v1146_v61, %v1145_v57 }
 0x29a   : > { %v1149_v5 = vadd.f32 %v1148_v29, %v1147_v0 }
 0x29c   : > { %v1151_v62 = vadd.f32 %v1150_v2, %v1149_v5 }
 0x29e   : > { %v1153_v7 = vadd.f32 %v1152_v6, %v1151_v62 }
 0x2a0   : > { %v1155_v10 = vadd.f32 %v1154_v8, %v1153_v7 }
 0x2a2   : > { %v1157_v59 = vadd.f32 %v1156_v31, %v1155_v10 }
 0x2a4   : > { %v1159_v51 = vadd.f32 %v1158_v16, %v1157_v59 }
 0x2a6   : > { %v1161_v22 = vadd.f32 %v1160_v18, %v1159_v51 }
 0x2a8   : > { %v1163_v4 = vadd.f32 %v1162_v23, %v1161_v22 }
 0x2aa   : > { %v1165_v12 = vadd.f32 %v1164_v26, %v1163_v4 }
 0x2ac   : > { %v1167_v19 = vadd.f32 %v1166_v27, %v1165_v12 }
 0x2ae   : > { %v1168_v48 = vrot.slane %v1167_v19, 4 }
 0x2b0   : > { %v1169_v30 = vadd.f32 %v1168_v48, %v1167_v19 }
 0x2b2   : > { %v1170_v63 = vrot.slane %v1169_v30, 2 }
 0x2b4   : > { %v1171_v32 = vadd.f32 %v1170_v63, %v1169_v30 }
 0x2b6   : > { %v1172_v36 = vrot.slane %v1171_v32, 1 }
 0x2b8   : > { %v1173_v9 = vadd.f32 %v1172_v36, %v1171_v32 }
 0x2ba   : > { %v1175_v34 = vsel %vm1174_vm10, %v2397_v28, %v1173_v9 }
 0x2bb   : > { %1177 = vst.msk [vmem:[%s200_s28] sm:$0x3] %vm1176_vm11, %v1175_v34 }
 0x2bc   : > { %1564 = shalt.err (!%p1561_p12)
}
 0x2bd   : > { %s1565_s20 = scalar_lea.hbm %s2436_s11, 32  ;;  %s1569_s10 = scalar_lea.hbm %s2494_s3, 128 }
 0x2be   : > { %p1566_p13 = scmp.ne.s32.totalorder %s2436_s11, %s1565_s20  ;;  %p1570_p2 = scmp.lt.u32.totalorder %s2436_s11, %s2494_s3 }
 0x2bf   : > { %p1571_p4 = scmp.lt.u32.totalorder %s1569_s10, %s1565_s20  ;;  %p1573_p6 = scmp.lt.u32.totalorder %s1565_s20, %s2436_s11 }
 0x2c0   : > { %p1567_p0 = pnand %p1566_p13, %p1733_p3 }
 0x2c1   : > { %p1572_p5 = por %p1571_p4, %p1570_p2 }
 0x2c2   : > { %p1568_p1 = pneg %p1567_p0 }
 0x2c3   : > { %p1574_p7 = por %p1573_p6, %p1572_p5 }
 0x2c5   : > { %p1575_p9 = pnand %p1574_p7, %p1568_p1 }
 0x2c7   : > { %1578 = shalt.err (!%p1575_p9)
}
 0x2c8   : > { %1439 = dma.vmem_to_hbm [thread:$0]  (%p1733_p3), %s2438_s29, 32, %s2436_s11, %s1184_s15  }
 0x2c9 PF: > { %p1449_p10 = scmp.ge.s32.totalorder %s1649_s19, 2  ;;  %s1229_s28 = sand.u32 1, %s1621_s12  }
 0x2ca   : > { %s1230_s27 = scalar_lea.sflag [#allocation3], %s1229_s28 }
 0x2cb   : > { %p1443_p11 = pnand %p1449_p10, %p1742_p8 }
 0x2cd   : > { %1612 = dma.done.wait (!%p1443_p11), %s1230_s27, 2048  }
 0x2ce   : > { %1614 = vsyncadd (!%p1443_p11), %s1230_s27, 4294965248  ;;  %s1239_s8 = scalar_lea.sflag [#allocation5], %s1229_s28 }
 0x2cf   : > { %1616 = dma.done.wait (!%p1443_p11), %s1239_s8, 32  }
 0x2d0   : > { %1618 = vsyncadd (!%p1443_p11), %s1239_s8, 4294967264  ;;  %s20_s19 = sadd.s32 1, %s1649_s19   ;;  %s2497_s12 = smov %s1625_s13 }
 0x2d1   : > { %p17_p12 = scmp.ge.s32.totalorder %s20_s19, 6   ;;  %s2498_s13 = smov %s1629_s14 }
 0x2d2   : > { %s2499_s14 = smov %s1751_s30  ;;  %s2500_s15 = smov %s1641_s17 }
 0x2d3   : > { %s2501_s16 = smov %s1645_s18  ;;  %s2502_s17 = smov %s2505_s22 }
 0x2d4   : > { %s2503_s18 = smov %s2509_s23  ;;  %19 = sbr.rel (!%p17_p12) target bundleno = 7 (0x7), region = 80 }
 0x2db   :  { %1244 = vsyncpa [#allocation3], 1 }
 0x2dc   :  { %1246 = vsyncpa [#allocation3 + $0x1], 1 }
 0x2dd   :  { %1247 = vsyncpa [#allocation5], 1 }
 0x2de   :  { %1249 = vsyncpa [#allocation5 + $0x1], 1 }

</bundles_post_ra>
